<compile_context>
chip_gen: v7x
topology: tpu7x:2x2x1
jax: 0.10.0
libtpu: 0.0.40
codegen_flags: <defaults>
</compile_context>

<pallas_src>
import functools

import jax
import jax.numpy as jnp
import numpy as np
from jax.experimental import pallas as pl
from jax.experimental.pallas import tpu as pltpu


def _round_up(x, m):
    return ((x + m - 1) // m) * m


def _pick_row_tile(oh, ow, cout_pad, budget_bytes=2 << 20):
    """Largest row tile whose f32 accumulator fits `budget_bytes` and keeps
    the (rows*ow, cout_pad) output block legal (second-minor % 8 == 0)."""
    if oh * ow * cout_pad * 4 <= budget_bytes:
        return oh
    for t in range(oh - 1, 0, -1):
        if oh % t == 0 and (t * ow) % 8 == 0 and t * ow * cout_pad * 4 <= budget_bytes:
            return t
    return oh


def _conv_kernel(x_ref, w_ref, b_ref, o_ref, *, kh_size, kw_size, stride,
                 row_tile, out_w, cout_pad):
    """One grid point = (group g, batch n, output row-tile r).

    x_ref : (s*s, Hq, Wq, Cin_g)   phase-split padded image, one (n, g) slice
    w_ref : (KH, KW, Cin_g, Cout_pad)  per-group weights (Cout lane-padded)
    b_ref : (1, Cout_pad)          per-group bias (f32)
    o_ref : (row_tile*OW, Cout_pad) flattened output rows for this tile
    """
    r = pl.program_id(2)
    m = row_tile * out_w

    # Bias initializes the register accumulator (f32).
    acc = jnp.broadcast_to(b_ref[...].astype(jnp.float32), (m, cout_pad))

    # Statically unrolled tap loop: KH*KW MXU dots accumulated in registers.
    for kh in range(kh_size):
        ah, ph = kh // stride, kh % stride
        for kw in range(kw_size):
            aw, pw = kw // stride, kw % stride
            phase = ph * stride + pw
            xs = x_ref[phase,
                       pl.ds(r * row_tile + ah, row_tile),
                       pl.ds(aw, out_w), :]                 # (rows, OW, Cin_g)
            xs2 = xs.reshape(m, xs.shape[-1])               # (rows*OW, Cin_g)
            acc = acc + jnp.dot(xs2, w_ref[kh, kw],
                                preferred_element_type=jnp.float32)

    o_ref[...] = acc.astype(o_ref.dtype)


def hrconv_forward(x_nchw, weight, bias, stride, padding=0,
                   dilation=False, groups=1):
    """Semantics of F.conv2d(x, weight, bias, stride, padding, 1, groups).

    x_nchw : (N, Cin, H, W)   weight : (Cout, Cin//groups, KH, KW)
    bias   : (Cout,) or None  -> output (N, Cout, OH, OW)
    """
    assert not dilation, "HRConv does not support dilation"
    N, Cin, H, W = x_nchw.shape
    Cout, Cin_g, KH, KW = weight.shape
    G = groups
    assert Cin == Cin_g * G and Cout % G == 0
    Cout_g = Cout // G
    s = int(stride)
    assert s >= 1

    if bias is None:
        bias = jnp.zeros((Cout,), x_nchw.dtype)

    Hp, Wp = H + 2 * padding, W + 2 * padding
    OH = (Hp - KH) // s + 1
    OW = (Wp - KW) // s + 1
    assert OH > 0 and OW > 0
    Hq, Wq = -(-Hp // s), -(-Wp // s)          # phase-plane extents
    Cout_pad = _round_up(Cout_g, 128)          # lane-dense output / weights

    # ---------------- glue: layout plumbing only ----------------
    x_nhwc = jnp.transpose(x_nchw, (0, 2, 3, 1))
    xp = jnp.pad(x_nhwc, ((0, 0),
                          (padding, padding + Hq * s - Hp),
                          (padding, padding + Wq * s - Wp),
                          (0, 0)))
    # Phase split (space-to-depth): xph[n, g, ph*s+pw, i, j, c]
    #   = xp[n, s*i+ph, s*j+pw, g*Cin_g + c]
    xph = xp.reshape(N, Hq, s, Wq, s, Cin).transpose(0, 2, 4, 1, 3, 5)
    xph = xph.reshape(N, s * s, Hq, Wq, G, Cin_g).transpose(0, 4, 1, 2, 3, 5)
    # -> (N, G, s*s, Hq, Wq, Cin_g)

    w5 = weight.reshape(G, Cout_g, Cin_g, KH, KW).transpose(0, 3, 4, 2, 1)
    w5 = jnp.pad(w5, ((0, 0),) * 4 + ((0, Cout_pad - Cout_g),))
    # -> (G, KH, KW, Cin_g, Cout_pad)

    b3 = jnp.pad(bias.reshape(G, 1, Cout_g).astype(jnp.float32),
                 ((0, 0), (0, 0), (0, Cout_pad - Cout_g)))
    # -> (G, 1, Cout_pad)

    row_tile = _pick_row_tile(OH, OW, Cout_pad)
    R = OH // row_tile
    M_tile = row_tile * OW

    kern = functools.partial(
        _conv_kernel, kh_size=KH, kw_size=KW, stride=s,
        row_tile=row_tile, out_w=OW, cout_pad=Cout_pad)

    out_flat = pl.pallas_call(
        kern,
        out_shape=jax.ShapeDtypeStruct((N, G, OH * OW, Cout_pad), x_nchw.dtype),
        grid=(G, N, R),
        in_specs=[
            # phase-split padded image of (batch n, group g); constant over r
            pl.BlockSpec((None, None, s * s, Hq, Wq, Cin_g),
                         lambda g, n, r: (n, g, 0, 0, 0, 0)),
            # per-group weights; constant over n and r -> DMA'd once per group
            pl.BlockSpec((None, KH, KW, Cin_g, Cout_pad),
                         lambda g, n, r: (g, 0, 0, 0, 0)),
            # per-group bias
            pl.BlockSpec((None, 1, Cout_pad),
                         lambda g, n, r: (g, 0, 0)),
        ],
        out_specs=pl.BlockSpec((None, None, M_tile, Cout_pad),
                               lambda g, n, r: (n, g, r, 0)),
        compiler_params=pltpu.CompilerParams(
            dimension_semantics=("parallel", "parallel", "parallel"),
            vmem_limit_bytes=32 * 1024 * 1024),
    )(xph, w5, b3)

    out = out_flat.reshape(N, G, OH, OW, Cout_pad)[..., :Cout_g]
    out = jnp.transpose(out, (0, 1, 4, 2, 3)).reshape(N, Cout, OH, OW)
    return out


if __name__ == "__main__":
    key = jax.random.PRNGKey(0)
    k_x, k_w, k_b = jax.random.split(key, 3)

    N, Cin, H, W = 2, 4, 16, 16
    Cout, KH, KW = 8, 3, 3

    x = jax.random.normal(k_x, (N, Cin, H, W), jnp.float32)
    weight = jax.random.normal(k_w, (Cout, Cin, KH, KW), jnp.float32) * 0.1
    bias = jax.random.normal(k_b, (Cout,), jnp.float32) * 0.1

    def ref_conv(x, w, b, stride, padding, groups=1):
        y = jax.lax.conv_general_dilated(
            x, w, window_strides=(stride, stride),
            padding=[(padding, padding), (padding, padding)],
            dimension_numbers=("NCHW", "OIHW", "NCHW"),
            feature_group_count=groups)
        return y + b[None, :, None, None]

    # stride 1, padding 1
    out1 = jax.block_until_ready(
        hrconv_forward(x, weight, bias, stride=1, padding=1))
    np.testing.assert_allclose(np.asarray(out1),
                               np.asarray(ref_conv(x, weight, bias, 1, 1)),
                               rtol=1e-4, atol=1e-4)

    # stride 2, padding 1 (handled in-kernel via phase-split input)
    out2 = jax.block_until_ready(
        hrconv_forward(x, weight, bias, stride=2, padding=1))
    np.testing.assert_allclose(np.asarray(out2),
                               np.asarray(ref_conv(x, weight, bias, 2, 1)),
                               rtol=1e-4, atol=1e-4)

    # grouped conv (groups=2), single pallas_call with a group grid axis
    w_grp = jax.random.normal(k_w, (Cout, Cin // 2, KH, KW), jnp.float32) * 0.1
    outg = jax.block_until_ready(
        hrconv_forward(x, w_grp, bias, stride=1, padding=1, groups=2))
    np.testing.assert_allclose(
        np.asarray(outg),
        np.asarray(ref_conv(x, w_grp, bias, 1, 1, groups=2)),
        rtol=1e-4, atol=1e-4)

    print("KERNEL_OK")
</pallas_src>

<mosaic_0001>
module attributes {stable_mosaic.version = 11 : i64} {
  func.func @_conv_kernel(%arg0: i32, %arg1: i32, %arg2: i32, %arg3: memref<1x1x1x18x18x4xf32, #tpu.memory_space<vmem>>, %arg4: memref<1x3x3x4x128xf32, #tpu.memory_space<vmem>>, %arg5: memref<1x1x128xf32, #tpu.memory_space<vmem>>, %arg6: memref<1x1x256x128xf32, #tpu.memory_space<vmem>>) attributes {dimension_semantics = [#tpu.dimension_semantics<parallel>, #tpu.dimension_semantics<parallel>, #tpu.dimension_semantics<parallel>], iteration_bounds = array<i64: 1, 2, 1>, scalar_prefetch = 0 : i64, scratch_operands = 0 : i64, tpu.core_type = #tpu.core_type<tc>, window_params = [{transform_indices = @transform_0, window_bounds = array<i64: 1, 1, 1, 18, 18, 4>}, {transform_indices = @transform_1, window_bounds = array<i64: 1, 3, 3, 4, 128>}, {transform_indices = @transform_2, window_bounds = array<i64: 1, 1, 128>}, {transform_indices = @transform_3, window_bounds = array<i64: 1, 1, 256, 128>}]} {
    %c0 = arith.constant 0 : index
    %c0_0 = arith.constant 0 : index
    %c0_1 = arith.constant 0 : index
    %0 = vector.load %arg5[%c0, %c0_0, %c0_1] : memref<1x1x128xf32, #tpu.memory_space<vmem>>, vector<1x1x128xf32>
    %1 = vector.shape_cast %0 : vector<1x1x128xf32> to vector<1x128xf32>
    %2 = vector.shape_cast %1 : vector<1x128xf32> to vector<1x128xf32>
    %3 = vector.broadcast %2 : vector<1x128xf32> to vector<256x128xf32>
    %c16_i32 = arith.constant 16 : i32
    %4 = arith.muli %arg2, %c16_i32 : i32
    %c0_i32 = arith.constant 0 : i32
    %5 = arith.addi %4, %c0_i32 : i32
    %c0_2 = arith.constant 0 : index
    %c0_3 = arith.constant 0 : index
    %c0_4 = arith.constant 0 : index
    %6 = arith.index_cast %5 : i32 to index
    %c0_5 = arith.constant 0 : index
    %c0_6 = arith.constant 0 : index
    %7 = vector.load %arg3[%c0_2, %c0_3, %c0_4, %6, %c0_5, %c0_6] : memref<1x1x1x18x18x4xf32, #tpu.memory_space<vmem>>, vector<1x1x1x16x16x4xf32>
    %8 = vector.shape_cast %7 : vector<1x1x1x16x16x4xf32> to vector<16x16x4xf32>
    %9 = vector.shape_cast %8 : vector<16x16x4xf32> to vector<256x4xf32>
    %c0_7 = arith.constant 0 : index
    %c0_8 = arith.constant 0 : index
    %c0_9 = arith.constant 0 : index
    %c0_10 = arith.constant 0 : index
    %c0_11 = arith.constant 0 : index
    %10 = vector.load %arg4[%c0_7, %c0_8, %c0_9, %c0_10, %c0_11] : memref<1x3x3x4x128xf32, #tpu.memory_space<vmem>>, vector<1x1x1x4x128xf32>
    %11 = vector.shape_cast %10 : vector<1x1x1x4x128xf32> to vector<4x128xf32>
    %cst = arith.constant dense<0.000000e+00> : vector<256x128xf32>
    %12 = tpu.matmul %9, %11, %cst {dimension_numbers = #tpu.dot_dimension_numbers<[1], [0], [0], [1], [0, 0, 1, 1], [], []>} : vector<256x4xf32>, vector<4x128xf32>, vector<256x128xf32> -> vector<256x128xf32>
    %13 = arith.addf %3, %12 : vector<256x128xf32>
    %c16_i32_12 = arith.constant 16 : i32
    %14 = arith.muli %arg2, %c16_i32_12 : i32
    %c0_i32_13 = arith.constant 0 : i32
    %15 = arith.addi %14, %c0_i32_13 : i32
    %c0_14 = arith.constant 0 : index
    %c0_15 = arith.constant 0 : index
    %c0_16 = arith.constant 0 : index
    %16 = arith.index_cast %15 : i32 to index
    %c1 = arith.constant 1 : index
    %c0_17 = arith.constant 0 : index
    %17 = vector.load %arg3[%c0_14, %c0_15, %c0_16, %16, %c1, %c0_17] : memref<1x1x1x18x18x4xf32, #tpu.memory_space<vmem>>, vector<1x1x1x16x16x4xf32>
    %18 = vector.shape_cast %17 : vector<1x1x1x16x16x4xf32> to vector<16x16x4xf32>
    %19 = vector.shape_cast %18 : vector<16x16x4xf32> to vector<256x4xf32>
    %c0_18 = arith.constant 0 : index
    %c0_19 = arith.constant 0 : index
    %c1_20 = arith.constant 1 : index
    %c0_21 = arith.constant 0 : index
    %c0_22 = arith.constant 0 : index
    %20 = vector.load %arg4[%c0_18, %c0_19, %c1_20, %c0_21, %c0_22] : memref<1x3x3x4x128xf32, #tpu.memory_space<vmem>>, vector<1x1x1x4x128xf32>
    %21 = vector.shape_cast %20 : vector<1x1x1x4x128xf32> to vector<4x128xf32>
    %cst_23 = arith.constant dense<0.000000e+00> : vector<256x128xf32>
    %22 = tpu.matmul %19, %21, %cst_23 {dimension_numbers = #tpu.dot_dimension_numbers<[1], [0], [0], [1], [0, 0, 1, 1], [], []>} : vector<256x4xf32>, vector<4x128xf32>, vector<256x128xf32> -> vector<256x128xf32>
    %23 = arith.addf %13, %22 : vector<256x128xf32>
    %c16_i32_24 = arith.constant 16 : i32
    %24 = arith.muli %arg2, %c16_i32_24 : i32
    %c0_i32_25 = arith.constant 0 : i32
    %25 = arith.addi %24, %c0_i32_25 : i32
    %c0_26 = arith.constant 0 : index
    %c0_27 = arith.constant 0 : index
    %c0_28 = arith.constant 0 : index
    %26 = arith.index_cast %25 : i32 to index
    %c2 = arith.constant 2 : index
    %c0_29 = arith.constant 0 : index
    %27 = vector.load %arg3[%c0_26, %c0_27, %c0_28, %26, %c2, %c0_29] : memref<1x1x1x18x18x4xf32, #tpu.memory_space<vmem>>, vector<1x1x1x16x16x4xf32>
    %28 = vector.shape_cast %27 : vector<1x1x1x16x16x4xf32> to vector<16x16x4xf32>
    %29 = vector.shape_cast %28 : vector<16x16x4xf32> to vector<256x4xf32>
    %c0_30 = arith.constant 0 : index
    %c0_31 = arith.constant 0 : index
    %c2_32 = arith.constant 2 : index
    %c0_33 = arith.constant 0 : index
    %c0_34 = arith.constant 0 : index
    %30 = vector.load %arg4[%c0_30, %c0_31, %c2_32, %c0_33, %c0_34] : memref<1x3x3x4x128xf32, #tpu.memory_space<vmem>>, vector<1x1x1x4x128xf32>
    %31 = vector.shape_cast %30 : vector<1x1x1x4x128xf32> to vector<4x128xf32>
    %cst_35 = arith.constant dense<0.000000e+00> : vector<256x128xf32>
    %32 = tpu.matmul %29, %31, %cst_35 {dimension_numbers = #tpu.dot_dimension_numbers<[1], [0], [0], [1], [0, 0, 1, 1], [], []>} : vector<256x4xf32>, vector<4x128xf32>, vector<256x128xf32> -> vector<256x128xf32>
    %33 = arith.addf %23, %32 : vector<256x128xf32>
    %c16_i32_36 = arith.constant 16 : i32
    %34 = arith.muli %arg2, %c16_i32_36 : i32
    %c1_i32 = arith.constant 1 : i32
    %35 = arith.addi %34, %c1_i32 : i32
    %c0_37 = arith.constant 0 : index
    %c0_38 = arith.constant 0 : index
    %c0_39 = arith.constant 0 : index
    %36 = arith.index_cast %35 : i32 to index
    %c0_40 = arith.constant 0 : index
    %c0_41 = arith.constant 0 : index
    %37 = vector.load %arg3[%c0_37, %c0_38, %c0_39, %36, %c0_40, %c0_41] : memref<1x1x1x18x18x4xf32, #tpu.memory_space<vmem>>, vector<1x1x1x16x16x4xf32>
    %38 = vector.shape_cast %37 : vector<1x1x1x16x16x4xf32> to vector<16x16x4xf32>
    %39 = vector.shape_cast %38 : vector<16x16x4xf32> to vector<256x4xf32>
    %c0_42 = arith.constant 0 : index
    %c1_43 = arith.constant 1 : index
    %c0_44 = arith.constant 0 : index
    %c0_45 = arith.constant 0 : index
    %c0_46 = arith.constant 0 : index
    %40 = vector.load %arg4[%c0_42, %c1_43, %c0_44, %c0_45, %c0_46] : memref<1x3x3x4x128xf32, #tpu.memory_space<vmem>>, vector<1x1x1x4x128xf32>
    %41 = vector.shape_cast %40 : vector<1x1x1x4x128xf32> to vector<4x128xf32>
    %cst_47 = arith.constant dense<0.000000e+00> : vector<256x128xf32>
    %42 = tpu.matmul %39, %41, %cst_47 {dimension_numbers = #tpu.dot_dimension_numbers<[1], [0], [0], [1], [0, 0, 1, 1], [], []>} : vector<256x4xf32>, vector<4x128xf32>, vector<256x128xf32> -> vector<256x128xf32>
    %43 = arith.addf %33, %42 : vector<256x128xf32>
    %c16_i32_48 = arith.constant 16 : i32
    %44 = arith.muli %arg2, %c16_i32_48 : i32
    %c1_i32_49 = arith.constant 1 : i32
    %45 = arith.addi %44, %c1_i32_49 : i32
    %c0_50 = arith.constant 0 : index
    %c0_51 = arith.constant 0 : index
    %c0_52 = arith.constant 0 : index
    %46 = arith.index_cast %45 : i32 to index
    %c1_53 = arith.constant 1 : index
    %c0_54 = arith.constant 0 : index
    %47 = vector.load %arg3[%c0_50, %c0_51, %c0_52, %46, %c1_53, %c0_54] : memref<1x1x1x18x18x4xf32, #tpu.memory_space<vmem>>, vector<1x1x1x16x16x4xf32>
    %48 = vector.shape_cast %47 : vector<1x1x1x16x16x4xf32> to vector<16x16x4xf32>
    %49 = vector.shape_cast %48 : vector<16x16x4xf32> to vector<256x4xf32>
    %c0_55 = arith.constant 0 : index
    %c1_56 = arith.constant 1 : index
    %c1_57 = arith.constant 1 : index
    %c0_58 = arith.constant 0 : index
    %c0_59 = arith.constant 0 : index
    %50 = vector.load %arg4[%c0_55, %c1_56, %c1_57, %c0_58, %c0_59] : memref<1x3x3x4x128xf32, #tpu.memory_space<vmem>>, vector<1x1x1x4x128xf32>
    %51 = vector.shape_cast %50 : vector<1x1x1x4x128xf32> to vector<4x128xf32>
    %cst_60 = arith.constant dense<0.000000e+00> : vector<256x128xf32>
    %52 = tpu.matmul %49, %51, %cst_60 {dimension_numbers = #tpu.dot_dimension_numbers<[1], [0], [0], [1], [0, 0, 1, 1], [], []>} : vector<256x4xf32>, vector<4x128xf32>, vector<256x128xf32> -> vector<256x128xf32>
    %53 = arith.addf %43, %52 : vector<256x128xf32>
    %c16_i32_61 = arith.constant 16 : i32
    %54 = arith.muli %arg2, %c16_i32_61 : i32
    %c1_i32_62 = arith.constant 1 : i32
    %55 = arith.addi %54, %c1_i32_62 : i32
    %c0_63 = arith.constant 0 : index
    %c0_64 = arith.constant 0 : index
    %c0_65 = arith.constant 0 : index
    %56 = arith.index_cast %55 : i32 to index
    %c2_66 = arith.constant 2 : index
    %c0_67 = arith.constant 0 : index
    %57 = vector.load %arg3[%c0_63, %c0_64, %c0_65, %56, %c2_66, %c0_67] : memref<1x1x1x18x18x4xf32, #tpu.memory_space<vmem>>, vector<1x1x1x16x16x4xf32>
    %58 = vector.shape_cast %57 : vector<1x1x1x16x16x4xf32> to vector<16x16x4xf32>
    %59 = vector.shape_cast %58 : vector<16x16x4xf32> to vector<256x4xf32>
    %c0_68 = arith.constant 0 : index
    %c1_69 = arith.constant 1 : index
    %c2_70 = arith.constant 2 : index
    %c0_71 = arith.constant 0 : index
    %c0_72 = arith.constant 0 : index
    %60 = vector.load %arg4[%c0_68, %c1_69, %c2_70, %c0_71, %c0_72] : memref<1x3x3x4x128xf32, #tpu.memory_space<vmem>>, vector<1x1x1x4x128xf32>
    %61 = vector.shape_cast %60 : vector<1x1x1x4x128xf32> to vector<4x128xf32>
    %cst_73 = arith.constant dense<0.000000e+00> : vector<256x128xf32>
    %62 = tpu.matmul %59, %61, %cst_73 {dimension_numbers = #tpu.dot_dimension_numbers<[1], [0], [0], [1], [0, 0, 1, 1], [], []>} : vector<256x4xf32>, vector<4x128xf32>, vector<256x128xf32> -> vector<256x128xf32>
    %63 = arith.addf %53, %62 : vector<256x128xf32>
    %c16_i32_74 = arith.constant 16 : i32
    %64 = arith.muli %arg2, %c16_i32_74 : i32
    %c2_i32 = arith.constant 2 : i32
    %65 = arith.addi %64, %c2_i32 : i32
    %c0_75 = arith.constant 0 : index
    %c0_76 = arith.constant 0 : index
    %c0_77 = arith.constant 0 : index
    %66 = arith.index_cast %65 : i32 to index
    %c0_78 = arith.constant 0 : index
    %c0_79 = arith.constant 0 : index
    %67 = vector.load %arg3[%c0_75, %c0_76, %c0_77, %66, %c0_78, %c0_79] : memref<1x1x1x18x18x4xf32, #tpu.memory_space<vmem>>, vector<1x1x1x16x16x4xf32>
    %68 = vector.shape_cast %67 : vector<1x1x1x16x16x4xf32> to vector<16x16x4xf32>
    %69 = vector.shape_cast %68 : vector<16x16x4xf32> to vector<256x4xf32>
    %c0_80 = arith.constant 0 : index
    %c2_81 = arith.constant 2 : index
    %c0_82 = arith.constant 0 : index
    %c0_83 = arith.constant 0 : index
    %c0_84 = arith.constant 0 : index
    %70 = vector.load %arg4[%c0_80, %c2_81, %c0_82, %c0_83, %c0_84] : memref<1x3x3x4x128xf32, #tpu.memory_space<vmem>>, vector<1x1x1x4x128xf32>
    %71 = vector.shape_cast %70 : vector<1x1x1x4x128xf32> to vector<4x128xf32>
    %cst_85 = arith.constant dense<0.000000e+00> : vector<256x128xf32>
    %72 = tpu.matmul %69, %71, %cst_85 {dimension_numbers = #tpu.dot_dimension_numbers<[1], [0], [0], [1], [0, 0, 1, 1], [], []>} : vector<256x4xf32>, vector<4x128xf32>, vector<256x128xf32> -> vector<256x128xf32>
    %73 = arith.addf %63, %72 : vector<256x128xf32>
    %c16_i32_86 = arith.constant 16 : i32
    %74 = arith.muli %arg2, %c16_i32_86 : i32
    %c2_i32_87 = arith.constant 2 : i32
    %75 = arith.addi %74, %c2_i32_87 : i32
    %c0_88 = arith.constant 0 : index
    %c0_89 = arith.constant 0 : index
    %c0_90 = arith.constant 0 : index
    %76 = arith.index_cast %75 : i32 to index
    %c1_91 = arith.constant 1 : index
    %c0_92 = arith.constant 0 : index
    %77 = vector.load %arg3[%c0_88, %c0_89, %c0_90, %76, %c1_91, %c0_92] : memref<1x1x1x18x18x4xf32, #tpu.memory_space<vmem>>, vector<1x1x1x16x16x4xf32>
    %78 = vector.shape_cast %77 : vector<1x1x1x16x16x4xf32> to vector<16x16x4xf32>
    %79 = vector.shape_cast %78 : vector<16x16x4xf32> to vector<256x4xf32>
    %c0_93 = arith.constant 0 : index
    %c2_94 = arith.constant 2 : index
    %c1_95 = arith.constant 1 : index
    %c0_96 = arith.constant 0 : index
    %c0_97 = arith.constant 0 : index
    %80 = vector.load %arg4[%c0_93, %c2_94, %c1_95, %c0_96, %c0_97] : memref<1x3x3x4x128xf32, #tpu.memory_space<vmem>>, vector<1x1x1x4x128xf32>
    %81 = vector.shape_cast %80 : vector<1x1x1x4x128xf32> to vector<4x128xf32>
    %cst_98 = arith.constant dense<0.000000e+00> : vector<256x128xf32>
    %82 = tpu.matmul %79, %81, %cst_98 {dimension_numbers = #tpu.dot_dimension_numbers<[1], [0], [0], [1], [0, 0, 1, 1], [], []>} : vector<256x4xf32>, vector<4x128xf32>, vector<256x128xf32> -> vector<256x128xf32>
    %83 = arith.addf %73, %82 : vector<256x128xf32>
    %c16_i32_99 = arith.constant 16 : i32
    %84 = arith.muli %arg2, %c16_i32_99 : i32
    %c2_i32_100 = arith.constant 2 : i32
    %85 = arith.addi %84, %c2_i32_100 : i32
    %c0_101 = arith.constant 0 : index
    %c0_102 = arith.constant 0 : index
    %c0_103 = arith.constant 0 : index
    %86 = arith.index_cast %85 : i32 to index
    %c2_104 = arith.constant 2 : index
    %c0_105 = arith.constant 0 : index
    %87 = vector.load %arg3[%c0_101, %c0_102, %c0_103, %86, %c2_104, %c0_105] : memref<1x1x1x18x18x4xf32, #tpu.memory_space<vmem>>, vector<1x1x1x16x16x4xf32>
    %88 = vector.shape_cast %87 : vector<1x1x1x16x16x4xf32> to vector<16x16x4xf32>
    %89 = vector.shape_cast %88 : vector<16x16x4xf32> to vector<256x4xf32>
    %c0_106 = arith.constant 0 : index
    %c2_107 = arith.constant 2 : index
    %c2_108 = arith.constant 2 : index
    %c0_109 = arith.constant 0 : index
    %c0_110 = arith.constant 0 : index
    %90 = vector.load %arg4[%c0_106, %c2_107, %c2_108, %c0_109, %c0_110] : memref<1x3x3x4x128xf32, #tpu.memory_space<vmem>>, vector<1x1x1x4x128xf32>
    %91 = vector.shape_cast %90 : vector<1x1x1x4x128xf32> to vector<4x128xf32>
    %cst_111 = arith.constant dense<0.000000e+00> : vector<256x128xf32>
    %92 = tpu.matmul %89, %91, %cst_111 {dimension_numbers = #tpu.dot_dimension_numbers<[1], [0], [0], [1], [0, 0, 1, 1], [], []>} : vector<256x4xf32>, vector<4x128xf32>, vector<256x128xf32> -> vector<256x128xf32>
    %93 = arith.addf %83, %92 : vector<256x128xf32>
    %c0_112 = arith.constant 0 : index
    %c0_113 = arith.constant 0 : index
    %c0_114 = arith.constant 0 : index
    %c0_115 = arith.constant 0 : index
    %94 = vector.load %arg6[%c0_112, %c0_113, %c0_114, %c0_115] : memref<1x1x256x128xf32, #tpu.memory_space<vmem>>, vector<1x1x256x128xf32>
    %95 = vector.shape_cast %94 : vector<1x1x256x128xf32> to vector<256x128xf32>
    %96 = vector.shape_cast %93 : vector<256x128xf32> to vector<1x1x256x128xf32>
    tpu.vector_store %arg6[%c0_112, %c0_113, %c0_114, %c0_115], %96 {strides = array<i32>} : memref<1x1x256x128xf32, #tpu.memory_space<vmem>>, vector<1x1x256x128xf32>,
    return
  }
  func.func @transform_0(%arg0: i32, %arg1: i32, %arg2: i32) -> (i32, i32, i32, i32, i32, i32) {
    %c0_i32 = arith.constant 0 : i32
    %c0_i32_0 = arith.constant 0 : i32
    %c0_i32_1 = arith.constant 0 : i32
    %c0_i32_2 = arith.constant 0 : i32
    %c0_i32_3 = arith.constant 0 : i32
    return %arg1, %arg0, %c0_i32, %c0_i32_0, %c0_i32_1, %c0_i32_2 : i32, i32, i32, i32, i32, i32
  }
  func.func @transform_1(%arg0: i32, %arg1: i32, %arg2: i32) -> (i32, i32, i32, i32, i32) {
    %c0_i32 = arith.constant 0 : i32
    %c0_i32_0 = arith.constant 0 : i32
    %c0_i32_1 = arith.constant 0 : i32
    %c0_i32_2 = arith.constant 0 : i32
    %c0_i32_3 = arith.constant 0 : i32
    return %arg0, %c0_i32, %c0_i32_0, %c0_i32_1, %c0_i32_2 : i32, i32, i32, i32, i32
  }
  func.func @transform_2(%arg0: i32, %arg1: i32, %arg2: i32) -> (i32, i32, i32) {
    %c0_i32 = arith.constant 0 : i32
    %c0_i32_0 = arith.constant 0 : i32
    %c0_i32_1 = arith.constant 0 : i32
    return %arg0, %c0_i32, %c0_i32_0 : i32, i32, i32
  }
  func.func @transform_3(%arg0: i32, %arg1: i32, %arg2: i32) -> (i32, i32, i32, i32) {
    %c0_i32 = arith.constant 0 : i32
    %c0_i32_0 = arith.constant 0 : i32
    return %arg1, %arg0, %arg2, %c0_i32 : i32, i32, i32, i32
  }
}

</mosaic_0001>

<bundles_post_ra>
// kernel: tpu_custom_call.1
= control target key start
LH: loop header
LB: loop body
LE: loop exit
PB: predicated region body
PF: predicated region fallthrough
CT: control target
= control target key end

     0   :  { %8 = vsyncpa [#allocation3], 0  ;;  %s6783_s0 = inlined_call_operand.vmem [shape: f32[2,1,1,18,18,4], index: 0, kind: input, shape index: {}]   ;;  %s6784_s1 = inlined_call_operand.vmem [shape: f32[1,3,3,4,128], index: 1, kind: input, shape index: {}]   ;;  %s6785_s2 = inlined_call_operand.vmem [shape: f32[1,1,128], index: 2, kind: input, shape index: {}]   ;;  %s6786_s3 = inlined_call_operand.hbm [shape: f32[2,1,256,128], index: 3, kind: output, shape index: {}]  }
   0x1   :  { %10 = vsyncpa [#allocation3 + $0x1], 0  ;;  %s5653_s12 = smov 0   ;;  %s5655_s13 = smov 0  }
   0x2   :  { %s5657_s14 = smov 0   ;;  %s5659_s15 = smov 0  }
   0x3   :  { %s5661_s16 = smov 0   ;;  %s5663_s17 = smov 0  }
   0x4 LB: > { %s3942_s18 = sadd.s32 4294967295, %s5628_s17   ;;  %s3943_s19 = sadd.s32 4294967294, %s5628_s17   ;;  %s5628_s17 = sphi %s5663_s17, %s16_s17   ;;  %s5624_s16 = sphi %s5661_s16, %s6913_s16   ;;  %s5620_s15 = sphi %s5659_s15, %s6912_s15   ;;  %s5616_s14 = sphi %s5657_s14, %s6911_s14   ;;  %s5612_s13 = sphi %s5655_s13, %s6910_s13   ;;  %s5608_s12 = sphi %s5653_s12, %s6909_s12  }
   0x5   : > { %s31_s20 = sadd.s32 1, %s5624_s16  ;;  %s126_s21 = sadd.s32 1, %s5616_s14 }
   0x6   : > { %p33_p0 = scmp.ge.s32.totalorder %s31_s20, 2  ;;  %p136_p1 = scmp.ne.s32.totalorder %s5616_s14, %s5612_s13 }
   0x7   : > { %p137_p2 = scmp.eq.s32.totalorder %s3942_s18, 1  ;;  %p142_p3 = scmp.ne.s32.totalorder %s5612_s13, %s5608_s12 }
   0x8   : > { %s6915_s20 = smov (%p33_p0, %s31_s20), 0  ;;  %p143_p5 = scmp.eq.s32.totalorder %s3943_s19, 1 }
   0x9   : > { %p5693_p4 = por %p137_p2, %p136_p1  ;;  %s119_s23 = ssub.s32 %s5624_s16, %s6915_s20 }
   0xa   : > { %p3948_p6 = scmp.ge.s32.totalorder %s5628_s17, 1  ;;  %p124_p7 = scmp.eq.s32.totalorder %s119_s23, 0 }
   0xb   : > { %p5700_p8 = por %p143_p5, %p142_p3  ;;  %p187_p9 = scmp.lt.s32.totalorder %s5628_s17, 3 }
   0xc   : > { %s5706_s25 = scalar_select %p124_p7, %s5616_s14, %s126_s21  }
   0xd   : > { %p188_p10 = pnand %p3948_p6, %p187_p9 }
   0xf   : > { %191 = sbr.rel (%p188_p10) target bundleno = 547 (0x223), region = 32 }
  0x16   : > { %v283_v0 = vld [vmem:[%s6784_s1] sm:$0xf]  ;;  %vm381_vm0 = vcmask 1043456   ;;  %v5714_v1 = vld [vmem:[%s6784_s1 + $0x10] sm:$0xf]  ;;  %p223_p11 = scmp.lt.s32.totalorder %s5620_s15, 1 }
  0x17   : > { %4752 = vmatprep.subr.msk.mxu1 %vm381_vm0, %v283_v0  ;;  %4952 = vmatprep.subr.msk.mxu0 %vm381_vm0, %v5714_v1  ;;  %v3985_v2 = vld [vmem:[%s6784_s1 + $0x4] sm:$0xf]  ;;  %v4217_v3 = vld [vmem:[%s6784_s1 + $0x14] sm:$0xf]  ;;  %vm284_vm1 = vcmask 31744   ;;  %s220_s5 = sand.u32 1, %s5612_s13  }
  0x18   : > { %4753 = vmatpush3.msk.msra.mxu1 %vm381_vm0, %v283_v0  ;;  %s224_s7 = scalar_select %p223_p11, %s5620_s15, 1  ;;  %4953 = vmatpush3.msk.msra.mxu0 %vm381_vm0, %v5714_v1  ;;  %v5760_v10 = vld [vmem:[%s6784_s1 + $0x18] sm:$0xf]  ;;  %v5765_v11 = vld [vmem:[%s6784_s1 + $0x8] sm:$0xf] }
  0x19   : > { %4802 = vmatprep.subr.msk.mxu1 %vm381_vm0, %v3985_v2  ;;  %5002 = vmatprep.subr.msk.mxu0 %vm381_vm0, %v4217_v3  ;;  %v5932_v44 = vld [vmem:[%s6784_s1 + $0x1c] sm:$0xf]  ;;  %s4454_s10 = sshll.u32 %s5620_s15, 12  ;;  %s6737_s15 = scalar_lea.sflag [#allocation3], %s220_s5 }
  0x1a   : > { %s5492_s8 = smul.u32 432, %s224_s7  ;;  %s6729_s21 = scalar_lea.hbm %s6786_s3, %s4454_s10 }
  0x1b   : > { %s5630_s26 = smov [#allocation2]  }
  0x1c   : > { %s5735_s11 = scalar_lea.vmem %s6783_s0, %s5492_s8  ;;  %s3949_s8 = sshll.u32 %s220_s5, 8 }
  0x1d   : > { %v251_v4 = vld [vmem:[%s5735_s11] sm:$0xff]  ;;  %v252_v6 = vld [vmem:[%s5735_s11 + $0x8] sm:$0xff]  ;;  %v5749_v8 = vld [vmem:[%s5735_s11 + $0x18] sm:$0xff]  ;;  %s6663_s9 = scalar_lea.vmem [#allocation2], %s3949_s8  ;;  %s5554_s27 = sshll.u32 %s5630_s26, 4  ;;  %s5555_s27 = int_to_ptr.vmem [resolvable:$false] %s5554_s27 }
  0x1e   : > { %v5739_v5 = vld [vmem:[%s5735_s11 + $0x19] sm:$0xff]  ;;  %4754 = vmatprep.mubr.msk.f32.mxu1 %vm284_vm1, %v251_v4  ;;  %v5746_v7 = vld [vmem:[%s5735_s11 + $0x21] sm:$0xff]  ;;  %6839 = vst [vmem:[#allocation5_spill] sm:$0xff] %v5749_v8  ;;  %v5752_v9 = vld [vmem:[%s5735_s11 + $0x31] sm:$0xff]  ;;  %s5556_s28 = scalar_lea.vmem %s5555_s27, 8192 }
  0x1f   : > { %4954 = vmatprep.mubr.msk.f32.mxu0 %vm284_vm1, %v5739_v5  ;;  %4755 = vmatmul.mubr.msk.f32.vlgmr.msra.gmra.mrb[0].mxu1 %vm284_vm1, %v252_v6  ;;  %v5770_v12 = vld [vmem:[%s5735_s11 + $0x20] sm:$0xff]  ;;  %v5780_v14 = vld [vmem:[%s5735_s11 + $0x30] sm:$0xff]  ;;  %v5798_v16 = vld [vmem:[%s5735_s11 + $0x38] sm:$0xff] }
  0x20   : > { %4955 = vmatmul.mubr.msk.f32.vlgmr.msra.gmra.mrb[0].mxu0 %vm284_vm1, %v5746_v7  ;;  %4803 = vmatpush3.msk.msra.mxu1 %vm381_vm0, %v3985_v2  ;;  %6840 = vst [vmem:[#allocation6_spill] sm:$0xff] %v5770_v12  ;;  %v5773_v13 = vld [vmem:[%s5735_s11 + $0x39] sm:$0xff]  ;;  %6841 = vst [vmem:[#allocation7_spill] sm:$0xff] %v5780_v14  ;;  %v5783_v15 = vld [vmem:[%s5735_s11 + $0x49] sm:$0xff] }
  0x21   : > { %5003 = vmatpush3.msk.msra.mxu0 %vm381_vm0, %v4217_v3  ;;  %4757 = vmatprep.mubr.msk.f32.mxu1 %vm284_vm1, %v5749_v8  ;;  %v5801_v17 = vld [vmem:[%s5735_s11 + $0x51] sm:$0xff]  ;;  %v5804_v18 = vld [vmem:[%s5735_s11 + $0x48] sm:$0xff]  ;;  %v5824_v22 = vld [vmem:[%s5735_s11 + $0x60] sm:$0xff] }
  0x22   : > { %4957 = vmatprep.mubr.msk.f32.mxu0 %vm284_vm1, %v5752_v9  ;;  %5052 = vmatprep.subr.msk.mxu0 %vm381_vm0, %v5760_v10  ;;  %6842 = vst [vmem:[#allocation8_spill] sm:$0xff] %v5804_v18  ;;  %v5807_v19 = vld [vmem:[%s5735_s11 + $0x61] sm:$0xff]  ;;  %v5818_v20 = vld [vmem:[%s5735_s11 + $0x50] sm:$0xff]  ;;  %6844 = vst [vmem:[#allocation10_spill] sm:$0xff] %v5824_v22 }
  0x23   : > { %4852 = vmatprep.subr.msk.mxu1 %vm381_vm0, %v5765_v11  ;;  %4758 = vmatmul.mubr.msk.f32.gmra.mrb[2].mxu1 %vm284_vm1, %v5770_v12  ;;  %6843 = vst [vmem:[#allocation9_spill] sm:$0xff] %v5818_v20  ;;  %v5821_v21 = vld [vmem:[%s5735_s11 + $0x69] sm:$0xff]  ;;  %v5827_v23 = vld [vmem:[%s5735_s11 + $0x79] sm:$0xff]  ;;  %v5841_v25 = vld [vmem:[%s5735_s11 + $0x81] sm:$0xff] }
  0x24   : > { %4958 = vmatmul.mubr.msk.f32.gmra.mrb[2].mxu0 %vm284_vm1, %v5773_v13  ;;  %4760 = vmatprep.mubr.msk.f32.mxu1 %vm284_vm1, %v5780_v14  ;;  %v5838_v24 = vld [vmem:[%s5735_s11 + $0x68] sm:$0xff]  ;;  %v5844_v26 = vld [vmem:[%s5735_s11 + $0x78] sm:$0xff]  ;;  %v5858_v28 = vld [vmem:[%s5735_s11 + $0x80] sm:$0xff] }
  0x25   : > { %4960 = vmatprep.mubr.msk.f32.mxu0 %vm284_vm1, %v5783_v15  ;;  %6845 = vst [vmem:[#allocation11_spill] sm:$0xff] %v5838_v24  ;;  %6846 = vst [vmem:[#allocation12_spill] sm:$0xff] %v5844_v26  ;;  %v5847_v27 = vld [vmem:[%s5735_s11 + $0x91] sm:$0xff]  ;;  %v5861_v29 = vld [vmem:[%s5735_s11 + $0x99] sm:$0xff] }
  0x26   : > { %6847 = vst [vmem:[#allocation13_spill] sm:$0xff] %v5858_v28  ;;  %v5864_v30 = vld [vmem:[%s5735_s11 + $0x90] sm:$0xff]  ;;  %v5878_v32 = vld [vmem:[%s5735_s11 + $0x98] sm:$0xff]  ;;  %v5884_v34 = vld [vmem:[%s5735_s11 + $0xa8] sm:$0xff] }
  0x27   : > { %4761 = vmatmul.mubr.msk.f32.gmra.mrb[4].mxu1 %vm284_vm1, %v5798_v16  ;;  %6848 = vst [vmem:[#allocation14_spill] sm:$0xff] %v5864_v30  ;;  %v5867_v31 = vld [vmem:[%s5735_s11 + $0xa9] sm:$0xff]  ;;  %6849 = vst [vmem:[#allocation15_spill] sm:$0xff] %v5878_v32  ;;  %v5881_v33 = vld [vmem:[%s5735_s11 + $0xb1] sm:$0xff] }
  0x28   : > { %4961 = vmatmul.mubr.msk.f32.gmra.mrb[4].mxu0 %vm284_vm1, %v5801_v17  ;;  %4763 = vmatprep.mubr.msk.f32.mxu1 %vm284_vm1, %v5804_v18  ;;  %6850 = vst [vmem:[#allocation16_spill] sm:$0xff] %v5884_v34  ;;  %v5887_v35 = vld [vmem:[%s5735_s11 + $0xc1] sm:$0xff]  ;;  %v5898_v36 = vld [vmem:[%s5735_s11 + $0xb0] sm:$0xff]  ;;  %v5924_v42 = vld [vmem:[%s5735_s11 + $0xd8] sm:$0xff] }
  0x29   : > { %4963 = vmatprep.mubr.msk.f32.mxu0 %vm284_vm1, %v5807_v19  ;;  %6851 = vst [vmem:[#allocation17_spill] sm:$0xff] %v5898_v36  ;;  %v5901_v37 = vld [vmem:[%s5735_s11 + $0xc9] sm:$0xff]  ;;  %v5904_v38 = vld [vmem:[%s5735_s11 + $0xc0] sm:$0xff]  ;;  %v5927_v43 = vld [vmem:[%s5735_s11 + $0x32] sm:$0xff] }
  0x2a   : > { %v5907_v39 = vld [vmem:[%s5735_s11 + $0x1a] sm:$0xff]  ;;  %v5918_v40 = vld [vmem:[%s5735_s11 + $0xc8] sm:$0xff]  ;;  %v5951_v47 = vld [vmem:[%s5735_s11 + $0xf0] sm:$0xff] }
  0x2b   : > { %4764 = vmatmul.mubr.msk.f32.gmra.mrb[6].mxu1 %vm284_vm1, %v5818_v20  ;;  %6852 = vst [vmem:[#allocation18_spill] sm:$0xff] %v5918_v40  ;;  %v5921_v41 = vld [vmem:[%s5735_s11 + $0x22] sm:$0xff]  ;;  %v5946_v46 = vld [vmem:[%s5735_s11 + $0x3a] sm:$0xff]  ;;  %v5954_v48 = vld [vmem:[%s5735_s11 + $0x4a] sm:$0xff] }
  0x2c   : > { %4964 = vmatmul.mubr.msk.f32.gmra.mrb[6].mxu0 %vm284_vm1, %v5821_v21  ;;  %4766 = vmatprep.mubr.msk.f32.mxu1 %vm284_vm1, %v5824_v22  ;;  %v5943_v45 = vld [vmem:[%s5735_s11 + $0xe0] sm:$0xff]  ;;  %v5967_v49 = vld [vmem:[%s5735_s11 + $0xf8] sm:$0xff]  ;;  %v5973_v51 = vld [vmem:[%s5735_s11 + $0x108] sm:$0xff] }
  0x2d   : > { %4966 = vmatprep.mubr.msk.f32.mxu0 %vm284_vm1, %v5827_v23  ;;  %v5970_v50 = vld [vmem:[%s5735_s11 + $0x52] sm:$0xff]  ;;  %v5976_v52 = vld [vmem:[%s5735_s11 + $0x62] sm:$0xff]  ;;  %v5990_v54 = vld [vmem:[%s5735_s11 + $0x6a] sm:$0xff] }
  0x2e   : > { %v5987_v53 = vld [vmem:[%s5735_s11 + $0x110] sm:$0xff]  ;;  %v5993_v55 = vld [vmem:[%s5735_s11 + $0x120] sm:$0xff]  ;;  %v6007_v57 = vld [vmem:[%s5735_s11 + $0x128] sm:$0xff] }
  0x2f   : > { %4767 = vmatmul.mubr.msk.f32.gmra.mrb[8].mxu1 %vm284_vm1, %v5838_v24  ;;  %v5996_v56 = vld [vmem:[%s5735_s11 + $0x7a] sm:$0xff]  ;;  %v6010_v58 = vld [vmem:[%s5735_s11 + $0x82] sm:$0xff]  ;;  %v6016_v60 = vld [vmem:[%s5735_s11 + $0x92] sm:$0xff] }
  0x30   : > { %4967 = vmatmul.mubr.msk.f32.gmra.mrb[8].mxu0 %vm284_vm1, %v5841_v25  ;;  %4769 = vmatprep.mubr.msk.f32.mxu1 %vm284_vm1, %v5844_v26  ;;  %v6013_v59 = vld [vmem:[%s5735_s11 + $0x138] sm:$0xff]  ;;  %6853 = vst [vmem:[#allocation19_spill] sm:$0xff] %v6016_v60  ;;  %v6027_v61 = vld [vmem:[%s5735_s11 + $0x140] sm:$0xff]  ;;  %v6033_v63 = vld [vmem:[%s5735_s11 + $0x150] sm:$0xff] }
  0x31   : > { %4969 = vmatprep.mubr.msk.f32.mxu0 %vm284_vm1, %v5847_v27  ;;  %v6030_v62 = vld [vmem:[%s5735_s11 + $0x9a] sm:$0xff]  ;;  %v6036_v0 = vld [vmem:[%s5735_s11 + $0xaa] sm:$0xff]  ;;  %v6050_v3 = vld [vmem:[%s5735_s11 + $0xb2] sm:$0xff] }
  0x32   : > { %6854 = vst [vmem:[#allocation20_spill] sm:$0xff] %v6030_v62  ;;  %6855 = vst [vmem:[#allocation21_spill] sm:$0xff] %v6036_v0  ;;  %v6047_v2 = vld [vmem:[%s5735_s11 + $0x158] sm:$0xff]  ;;  %v6053_v4 = vld [vmem:[%s5735_s11 + $0x168] sm:$0xff] }
  0x33   : > { %4770 = vmatmul.mubr.msk.f32.gmra.mrb[10].mxu1 %vm284_vm1, %v5858_v28  ;;  %6856 = vst [vmem:[#allocation22_spill] sm:$0xff] %v6047_v2  ;;  %6857 = vst [vmem:[#allocation23_spill] sm:$0xff] %v6050_v3  ;;  %v6056_v6 = vld [vmem:[%s5735_s11 + $0xc2] sm:$0xff]  ;;  %v6070_v12 = vld [vmem:[%s5735_s11 + $0xca] sm:$0xff] }
  0x34   : > { %4970 = vmatmul.mubr.msk.f32.gmra.mrb[10].mxu0 %vm284_vm1, %v5861_v29  ;;  %4772 = vmatprep.mubr.msk.f32.mxu1 %vm284_vm1, %v5864_v30  ;;  %6858 = vst [vmem:[#allocation24_spill] sm:$0xff] %v6053_v4  ;;  %6859 = vst [vmem:[#allocation25_spill] sm:$0xff] %v6056_v6  ;;  %v642_v8 = vld [vmem:[%s5735_s11 + $0x1] sm:$0xff] }
  0x35   : > { %4972 = vmatprep.mubr.msk.f32.mxu0 %vm284_vm1, %v5867_v31 }
  0x37   : > { %4773 = vmatmul.mubr.msk.f32.gmra.mrb[12].mxu1 %vm284_vm1, %v5878_v32 }
  0x38   : > { %4973 = vmatmul.mubr.msk.f32.gmra.mrb[12].mxu0 %vm284_vm1, %v5881_v33  ;;  %4775 = vmatprep.mubr.msk.f32.mxu1 %vm284_vm1, %v5884_v34 }
  0x39   : > { %4975 = vmatprep.mubr.msk.f32.mxu0 %vm284_vm1, %v5887_v35 }
  0x3b   : > { %4776 = vmatmul.mubr.msk.f32.gmra.mrb[14].mxu1 %vm284_vm1, %v5898_v36 }
  0x3c   : > { %4976 = vmatmul.mubr.msk.f32.gmra.mrb[14].mxu0 %vm284_vm1, %v5901_v37  ;;  %4778 = vmatprep.mubr.msk.f32.mxu1 %vm284_vm1, %v5904_v38 }
  0x3d   : > { %5004 = vmatprep.mubr.msk.f32.mxu0 %vm284_vm1, %v5907_v39 }
  0x3f   : > { %4779 = vmatmul.mubr.msk.f32.gmra.mrb[16].mxu1 %vm284_vm1, %v5918_v40 }
  0x40   : > { %5005 = vmatmul.mubr.msk.f32.vlgmr.msra.gmra.mrb[0].mxu0 %vm284_vm1, %v5921_v41  ;;  %4781 = vmatprep.mubr.msk.f32.mxu1 %vm284_vm1, %v5924_v42 }
  0x41   : > { %5053 = vmatpush3.msk.msra.mxu0 %vm381_vm0, %v5760_v10  ;;  %5007 = vmatprep.mubr.msk.f32.mxu0 %vm284_vm1, %v5927_v43  ;;  %v6067_v10 = vld [vmem:[%s5735_s11 + $0x170] sm:$0xff] }
  0x42   : > { %5102 = vmatprep.subr.msk.mxu0 %vm381_vm0, %v5932_v44  ;;  %6860 = vst [vmem:[#allocation26_spill] sm:$0xff] %v6067_v10 }
  0x43   : > { %4782 = vmatmul.mubr.msk.f32.gmra.mrb[18].mxu1 %vm284_vm1, %v5943_v45 }
  0x44   : > { %5008 = vmatmul.mubr.msk.f32.gmra.mrb[2].mxu0 %vm284_vm1, %v5946_v46  ;;  %4784 = vmatprep.mubr.msk.f32.mxu1 %vm284_vm1, %v5951_v47 }
  0x45   : > { %5010 = vmatprep.mubr.msk.f32.mxu0 %vm284_vm1, %v5954_v48 }
  0x47   : > { %4785 = vmatmul.mubr.msk.f32.gmra.mrb[20].mxu1 %vm284_vm1, %v5967_v49 }
  0x48   : > { %5011 = vmatmul.mubr.msk.f32.gmra.mrb[4].mxu0 %vm284_vm1, %v5970_v50  ;;  %4787 = vmatprep.mubr.msk.f32.mxu1 %vm284_vm1, %v5973_v51 }
  0x49   : > { %5013 = vmatprep.mubr.msk.f32.mxu0 %vm284_vm1, %v5976_v52 }
  0x4b   : > { %4788 = vmatmul.mubr.msk.f32.gmra.mrb[22].mxu1 %vm284_vm1, %v5987_v53 }
  0x4c   : > { %5014 = vmatmul.mubr.msk.f32.gmra.mrb[6].mxu0 %vm284_vm1, %v5990_v54  ;;  %4790 = vmatprep.mubr.msk.f32.mxu1 %vm284_vm1, %v5993_v55 }
  0x4d   : > { %5016 = vmatprep.mubr.msk.f32.mxu0 %vm284_vm1, %v5996_v56 }
  0x4f   : > { %4791 = vmatmul.mubr.msk.f32.gmra.mrb[24].mxu1 %vm284_vm1, %v6007_v57 }
  0x50   : > { %5017 = vmatmul.mubr.msk.f32.gmra.mrb[8].mxu0 %vm284_vm1, %v6010_v58  ;;  %4793 = vmatprep.mubr.msk.f32.mxu1 %vm284_vm1, %v6013_v59 }
  0x51   : > { %5019 = vmatprep.mubr.msk.f32.mxu0 %vm284_vm1, %v6016_v60  ;;  %v6093_v60 = vld [vmem:[%s6784_s1 + $0xc] sm:$0xf] }
  0x53   : > { %4794 = vmatmul.mubr.msk.f32.gmra.mrb[26].mxu1 %vm284_vm1, %v6027_v61 }
  0x54   : > { %5020 = vmatmul.mubr.msk.f32.gmra.mrb[10].mxu0 %vm284_vm1, %v6030_v62  ;;  %4796 = vmatprep.mubr.msk.f32.mxu1 %vm284_vm1, %v6033_v63  ;;  %v6088_v62 = vld [vmem:[%s5735_s11 + $0xf2] sm:$0xff] }
  0x55   : > { %5022 = vmatprep.mubr.msk.f32.mxu0 %vm284_vm1, %v6036_v0  ;;  %v6074_v0 = vld [vmem:[%s5735_s11 + $0xda] sm:$0xff] }
  0x56   : > { %6861 = vst [vmem:[#allocation27_spill] sm:$0xff] %v6074_v0 }
  0x57   : > { %4797 = vmatmul.mubr.msk.f32.gmra.mrb[28].mxu1 %vm284_vm1, %v6047_v2 }
  0x58   : > { %5023 = vmatmul.mubr.msk.f32.gmra.mrb[12].mxu0 %vm284_vm1, %v6050_v3  ;;  %4799 = vmatprep.mubr.msk.f32.mxu1 %vm284_vm1, %v6053_v4  ;;  %v6085_v3 = vld [vmem:[%s5735_s11 + $0xe2] sm:$0xff] }
  0x59   : > { %5025 = vmatprep.mubr.msk.f32.mxu0 %vm284_vm1, %v6056_v6  ;;  %v643_v6 = vld [vmem:[%s5735_s11 + $0x9] sm:$0xff] }
  0x5b   : > { %4800 = vmatmul.mubr.msk.f32.gmra.mrb[30].mxu1 %vm284_vm1, %v6067_v10 }
  0x5c   : > { %5026 = vmatmul.mubr.msk.f32.gmra.mrb[14].mxu0 %vm284_vm1, %v6070_v12  ;;  %4804 = vmatprep.mubr.msk.f32.mxu1 %vm284_vm1, %v642_v8  ;;  %v6103_v8 = vld [vmem:[%s5735_s11 + $0xfa] sm:$0xff] }
  0x5d   : > { %5028 = vmatprep.mubr.msk.f32.mxu0 %vm284_vm1, %v6074_v0  ;;  %v6108_v0 = vld [vmem:[%s5735_s11 + $0x10a] sm:$0xff] }
  0x5f   : > { %4805 = vmatmul.mubr.msk.f32.vlgmr.msra.gmra.mrb[0].mxu1 %vm284_vm1, %v643_v6  ;;  %v6138_v6 = vld [vmem:[%s5735_s11 + $0x13a] sm:$0xff] }
  0x60   : > { %5029 = vmatmul.mubr.msk.f32.gmra.mrb[16].mxu0 %vm284_vm1, %v6085_v3  ;;  %4853 = vmatpush3.msk.msra.mxu1 %vm381_vm0, %v5765_v11  ;;  %v6124_v11 = vld [vmem:[%s5735_s11 + $0x122] sm:$0xff]  ;;  %6865 = vst [vmem:[#allocation31_spill] sm:$0xff] %v6138_v6 }
  0x61   : > { %4807 = vmatprep.mubr.msk.f32.mxu1 %vm284_vm1, %v5739_v5  ;;  %5031 = vmatprep.mubr.msk.f32.mxu0 %vm284_vm1, %v6088_v62  ;;  %v6121_v5 = vld [vmem:[%s5735_s11 + $0x112] sm:$0xff]  ;;  %6863 = vst [vmem:[#allocation29_spill] sm:$0xff] %v6124_v11 }
  0x62   : > { %4902 = vmatprep.subr.msk.mxu1 %vm381_vm0, %v6093_v60  ;;  %6862 = vst [vmem:[#allocation28_spill] sm:$0xff] %v6121_v5 }
  0x63   : > { %4808 = vmatmul.mubr.msk.f32.gmra.mrb[2].mxu1 %vm284_vm1, %v5746_v7  ;;  %v6135_v7 = vld [vmem:[%s5735_s11 + $0x12a] sm:$0xff] }
  0x64   : > { %5032 = vmatmul.mubr.msk.f32.gmra.mrb[18].mxu0 %vm284_vm1, %v6103_v8  ;;  %4810 = vmatprep.mubr.msk.f32.mxu1 %vm284_vm1, %v5752_v9  ;;  %6864 = vst [vmem:[#allocation30_spill] sm:$0xff] %v6135_v7 }
  0x65   : > { %5034 = vmatprep.mubr.msk.f32.mxu0 %vm284_vm1, %v6108_v0 }
  0x67   : > { %4811 = vmatmul.mubr.msk.f32.gmra.mrb[4].mxu1 %vm284_vm1, %v5773_v13 }
  0x68   : > { %5035 = vmatmul.mubr.msk.f32.gmra.mrb[20].mxu0 %vm284_vm1, %v6121_v5  ;;  %4813 = vmatprep.mubr.msk.f32.mxu1 %vm284_vm1, %v5783_v15  ;;  %v6149_v5 = vld [vmem:[%s5735_s11 + $0x142] sm:$0xff] }
  0x69   : > { %5037 = vmatprep.mubr.msk.f32.mxu0 %vm284_vm1, %v6124_v11  ;;  %6866 = vst [vmem:[#allocation32_spill] sm:$0xff] %v6149_v5  ;;  %v6152_v11 = vld [vmem:[%s5735_s11 + $0x152] sm:$0xff] }
  0x6a   : > { %6867 = vst [vmem:[#allocation33_spill] sm:$0xff] %v6152_v11 }
  0x6b   : > { %4814 = vmatmul.mubr.msk.f32.gmra.mrb[6].mxu1 %vm284_vm1, %v5801_v17 }
  0x6c   : > { %5038 = vmatmul.mubr.msk.f32.gmra.mrb[22].mxu0 %vm284_vm1, %v6135_v7  ;;  %4816 = vmatprep.mubr.msk.f32.mxu1 %vm284_vm1, %v5807_v19  ;;  %v6163_v7 = vld [vmem:[%s5735_s11 + $0x15a] sm:$0xff] }
  0x6d   : > { %5040 = vmatprep.mubr.msk.f32.mxu0 %vm284_vm1, %v6138_v6  ;;  %6868 = vst [vmem:[#allocation34_spill] sm:$0xff] %v6163_v7  ;;  %v6166_v6 = vld [vmem:[%s5735_s11 + $0x16a] sm:$0xff] }
  0x6f   : > { %4817 = vmatmul.mubr.msk.f32.gmra.mrb[8].mxu1 %vm284_vm1, %v5821_v21 }
  0x70   : > { %5041 = vmatmul.mubr.msk.f32.gmra.mrb[24].mxu0 %vm284_vm1, %v6149_v5  ;;  %4819 = vmatprep.mubr.msk.f32.mxu1 %vm284_vm1, %v5827_v23  ;;  %v6177_v5 = vld [vmem:[%s5735_s11 + $0x172] sm:$0xff] }
  0x71   : > { %5043 = vmatprep.mubr.msk.f32.mxu0 %vm284_vm1, %v6152_v11  ;;  %6869 = vst [vmem:[#allocation35_spill] sm:$0xff] %v6177_v5  ;;  %v6180_v11 = vld [vmem:[%s5735_s11 + $0x182] sm:$0xff] }
  0x72   : > { %6870 = vst [vmem:[#allocation36_spill] sm:$0xff] %v6180_v11 }
  0x73   : > { %4820 = vmatmul.mubr.msk.f32.gmra.mrb[10].mxu1 %vm284_vm1, %v5841_v25 }
  0x74   : > { %5044 = vmatmul.mubr.msk.f32.gmra.mrb[26].mxu0 %vm284_vm1, %v6163_v7  ;;  %4822 = vmatprep.mubr.msk.f32.mxu1 %vm284_vm1, %v5847_v27  ;;  %v6191_v7 = vld [vmem:[%s5735_s11 + $0x18a] sm:$0xff] }
  0x75   : > { %5046 = vmatprep.mubr.msk.f32.mxu0 %vm284_vm1, %v6166_v6  ;;  %6871 = vst [vmem:[#allocation37_spill] sm:$0xff] %v6191_v7 }
  0x77   : > { %4823 = vmatmul.mubr.msk.f32.gmra.mrb[12].mxu1 %vm284_vm1, %v5861_v29 }
  0x78   : > { %5047 = vmatmul.mubr.msk.f32.gmra.mrb[28].mxu0 %vm284_vm1, %v6177_v5  ;;  %4825 = vmatprep.mubr.msk.f32.mxu1 %vm284_vm1, %v5867_v31  ;;  %v6202_v5 = vld [vmem:[%s5735_s11 + $0xd9] sm:$0xff] }
  0x79   : > { %5049 = vmatprep.mubr.msk.f32.mxu0 %vm284_vm1, %v6180_v11  ;;  %v6207_v11 = vld [vmem:[%s6784_s1 + $0x20] sm:$0xf] }
  0x7b   : > { %4826 = vmatmul.mubr.msk.f32.gmra.mrb[14].mxu1 %vm284_vm1, %v5881_v33 }
  0x7c   : > { %5050 = vmatmul.mubr.msk.f32.gmra.mrb[30].mxu0 %vm284_vm1, %v6191_v7  ;;  %4828 = vmatprep.mubr.msk.f32.mxu1 %vm284_vm1, %v5887_v35  ;;  %v6218_v7 = vld [vmem:[%s5735_s11 + $0xe1] sm:$0xff] }
  0x7d   : > { %5054 = vmatprep.mubr.msk.f32.mxu0 %vm284_vm1, %v5780_v14  ;;  %v6223_v14 = vld [vmem:[%s5735_s11 + $0xf1] sm:$0xff] }
  0x7f   : > { %4829 = vmatmul.mubr.msk.f32.gmra.mrb[16].mxu1 %vm284_vm1, %v5901_v37 }
  0x80   : > { %5055 = vmatmul.mubr.msk.f32.vlgmr.msra.gmra.mrb[0].mxu0 %vm284_vm1, %v5798_v16  ;;  %4831 = vmatprep.mubr.msk.f32.mxu1 %vm284_vm1, %v6202_v5 }
  0x81   : > { %5103 = vmatpush3.msk.msra.mxu0 %vm381_vm0, %v5932_v44  ;;  %5057 = vmatprep.mubr.msk.f32.mxu0 %vm284_vm1, %v5804_v18  ;;  %v6236_v44 = vld [vmem:[%s5735_s11 + $0xf9] sm:$0xff]  ;;  %v6239_v18 = vld [vmem:[%s5735_s11 + $0x109] sm:$0xff] }
  0x82   : > { %5152 = vmatprep.subr.msk.mxu0 %vm381_vm0, %v6207_v11 }
  0x83   : > { %4832 = vmatmul.mubr.msk.f32.gmra.mrb[18].mxu1 %vm284_vm1, %v6218_v7 }
  0x84   : > { %5058 = vmatmul.mubr.msk.f32.gmra.mrb[2].mxu0 %vm284_vm1, %v5818_v20  ;;  %4834 = vmatprep.mubr.msk.f32.mxu1 %vm284_vm1, %v6223_v14  ;;  %v6250_v20 = vld [vmem:[%s5735_s11 + $0x111] sm:$0xff] }
  0x85   : > { %5060 = vmatprep.mubr.msk.f32.mxu0 %vm284_vm1, %v5824_v22  ;;  %v6253_v22 = vld [vmem:[%s5735_s11 + $0x121] sm:$0xff] }
  0x87   : > { %4835 = vmatmul.mubr.msk.f32.gmra.mrb[20].mxu1 %vm284_vm1, %v6236_v44 }
  0x88   : > { %5061 = vmatmul.mubr.msk.f32.gmra.mrb[4].mxu0 %vm284_vm1, %v5838_v24  ;;  %4837 = vmatprep.mubr.msk.f32.mxu1 %vm284_vm1, %v6239_v18  ;;  %v6264_v24 = vld [vmem:[%s5735_s11 + $0x129] sm:$0xff] }
  0x89   : > { %5063 = vmatprep.mubr.msk.f32.mxu0 %vm284_vm1, %v5844_v26  ;;  %v6267_v26 = vld [vmem:[%s5735_s11 + $0x139] sm:$0xff] }
  0x8b   : > { %4838 = vmatmul.mubr.msk.f32.gmra.mrb[22].mxu1 %vm284_vm1, %v6250_v20 }
  0x8c   : > { %5064 = vmatmul.mubr.msk.f32.gmra.mrb[6].mxu0 %vm284_vm1, %v5858_v28  ;;  %4840 = vmatprep.mubr.msk.f32.mxu1 %vm284_vm1, %v6253_v22  ;;  %v6278_v28 = vld [vmem:[%s5735_s11 + $0x141] sm:$0xff] }
  0x8d   : > { %5066 = vmatprep.mubr.msk.f32.mxu0 %vm284_vm1, %v5864_v30  ;;  %v6281_v30 = vld [vmem:[%s5735_s11 + $0x151] sm:$0xff] }
  0x8e   : > { %6872 = vst [vmem:[#allocation38_spill] sm:$0xff] %v6281_v30 }
  0x8f   : > { %4841 = vmatmul.mubr.msk.f32.gmra.mrb[24].mxu1 %vm284_vm1, %v6264_v24 }
  0x90   : > { %5067 = vmatmul.mubr.msk.f32.gmra.mrb[8].mxu0 %vm284_vm1, %v5878_v32  ;;  %4843 = vmatprep.mubr.msk.f32.mxu1 %vm284_vm1, %v6267_v26  ;;  %v6292_v32 = vld [vmem:[%s5735_s11 + $0x159] sm:$0xff] }
  0x91   : > { %5069 = vmatprep.mubr.msk.f32.mxu0 %vm284_vm1, %v5884_v34  ;;  %v6295_v34 = vld [vmem:[%s5735_s11 + $0x169] sm:$0xff] }
  0x93   : > { %4844 = vmatmul.mubr.msk.f32.gmra.mrb[26].mxu1 %vm284_vm1, %v6278_v28 }
  0x94   : > { %5070 = vmatmul.mubr.msk.f32.gmra.mrb[10].mxu0 %vm284_vm1, %v5898_v36  ;;  %4846 = vmatprep.mubr.msk.f32.mxu1 %vm284_vm1, %v6281_v30  ;;  %v6306_v36 = vld [vmem:[%s5735_s11 + $0x171] sm:$0xff]  ;;  %v1032_v30 = vld [vmem:[%s5735_s11 + $0x2] sm:$0xff] }
  0x95   : > { %5072 = vmatprep.mubr.msk.f32.mxu0 %vm284_vm1, %v5904_v38 }
  0x97   : > { %4847 = vmatmul.mubr.msk.f32.gmra.mrb[28].mxu1 %vm284_vm1, %v6292_v32 }
  0x98   : > { %5073 = vmatmul.mubr.msk.f32.gmra.mrb[12].mxu0 %vm284_vm1, %v5918_v40  ;;  %4849 = vmatprep.mubr.msk.f32.mxu1 %vm284_vm1, %v6295_v34  ;;  %v1033_v40 = vld [vmem:[%s5735_s11 + $0xa] sm:$0xff] }
  0x99   : > { %5075 = vmatprep.mubr.msk.f32.mxu0 %vm284_vm1, %v5924_v42 }
  0x9b   : > { %4850 = vmatmul.mubr.msk.f32.gmra.mrb[30].mxu1 %vm284_vm1, %v6306_v36 }
  0x9c   : > { %5076 = vmatmul.mubr.msk.f32.gmra.mrb[14].mxu0 %vm284_vm1, %v5943_v45  ;;  %4854 = vmatprep.mubr.msk.f32.mxu1 %vm284_vm1, %v1032_v30  ;;  %v6361_v30 = vld [vmem:[%s5735_s11 + $0x180] sm:$0xff] }
  0x9d   : > { %5078 = vmatprep.mubr.msk.f32.mxu0 %vm284_vm1, %v5951_v47  ;;  %6873 = vst [vmem:[#allocation39_spill] sm:$0xff] %v6361_v30 }
  0x9f   : > { %4855 = vmatmul.mubr.msk.f32.vlgmr.msra.gmra.mrb[0].mxu1 %vm284_vm1, %v1033_v40  ;;  %v6372_v40 = vld [vmem:[%s5735_s11 + $0x188] sm:$0xff] }
  0xa0   : > { %5079 = vmatmul.mubr.msk.f32.gmra.mrb[16].mxu0 %vm284_vm1, %v5967_v49  ;;  %4903 = vmatpush3.msk.msra.mxu1 %vm381_vm0, %v6093_v60  ;;  %v6875_v60 = vld [vmem:[#allocation20_spill] sm:$0xff] }
  0xa1   : > { %4857 = vmatprep.mubr.msk.f32.mxu1 %vm284_vm1, %v5907_v39  ;;  %5081 = vmatprep.mubr.msk.f32.mxu0 %vm284_vm1, %v5973_v51  ;;  %v6874_v39 = vld [vmem:[#allocation19_spill] sm:$0xff] }
  0xa2   : > { %5202 = vmatprep.subr.msk.mxu1 %vm381_vm0, %v5714_v1 }
  0xa3   : > { %4858 = vmatmul.mubr.msk.f32.gmra.mrb[2].mxu1 %vm284_vm1, %v5921_v41  ;;  %v4281_v41 = vld [vmem:[%s5735_s11 + $0x198] sm:$0xff] }
  0xa4   : > { %5082 = vmatmul.mubr.msk.f32.gmra.mrb[18].mxu0 %vm284_vm1, %v5987_v53  ;;  %4860 = vmatprep.mubr.msk.f32.mxu1 %vm284_vm1, %v5927_v43 }
  0xa5   : > { %5084 = vmatprep.mubr.msk.f32.mxu0 %vm284_vm1, %v5993_v55 }
  0xa7   : > { %4861 = vmatmul.mubr.msk.f32.gmra.mrb[4].mxu1 %vm284_vm1, %v5946_v46 }
  0xa8   : > { %5085 = vmatmul.mubr.msk.f32.gmra.mrb[20].mxu0 %vm284_vm1, %v6007_v57  ;;  %4863 = vmatprep.mubr.msk.f32.mxu1 %vm284_vm1, %v5954_v48 }
  0xa9   : > { %5087 = vmatprep.mubr.msk.f32.mxu0 %vm284_vm1, %v6013_v59 }
  0xab   : > { %4864 = vmatmul.mubr.msk.f32.gmra.mrb[6].mxu1 %vm284_vm1, %v5970_v50 }
  0xac   : > { %5088 = vmatmul.mubr.msk.f32.gmra.mrb[22].mxu0 %vm284_vm1, %v6027_v61  ;;  %4866 = vmatprep.mubr.msk.f32.mxu1 %vm284_vm1, %v5976_v52 }
  0xad   : > { %5090 = vmatprep.mubr.msk.f32.mxu0 %vm284_vm1, %v6033_v63 }
  0xaf   : > { %4867 = vmatmul.mubr.msk.f32.gmra.mrb[8].mxu1 %vm284_vm1, %v5990_v54 }
  0xb0   : > { %5091 = vmatmul.mubr.msk.f32.gmra.mrb[24].mxu0 %vm284_vm1, %v6047_v2  ;;  %4869 = vmatprep.mubr.msk.f32.mxu1 %vm284_vm1, %v5996_v56  ;;  %v6877_v2 = vld [vmem:[#allocation23_spill] sm:$0xff] }
  0xb1   : > { %5093 = vmatprep.mubr.msk.f32.mxu0 %vm284_vm1, %v6053_v4  ;;  %v6876_v4 = vld [vmem:[#allocation21_spill] sm:$0xff] }
  0xb3   : > { %4870 = vmatmul.mubr.msk.f32.gmra.mrb[10].mxu1 %vm284_vm1, %v6010_v58 }
  0xb4   : > { %5094 = vmatmul.mubr.msk.f32.gmra.mrb[26].mxu0 %vm284_vm1, %v6067_v10  ;;  %4872 = vmatprep.mubr.msk.f32.mxu1 %vm284_vm1, %v6874_v39  ;;  %v4282_v10 = vld [vmem:[%s5735_s11 + $0x1a0] sm:$0xff] }
  0xb5   : > { %5096 = vmatprep.mubr.msk.f32.mxu0 %vm284_vm1, %v6361_v30  ;;  %v6878_v30 = vld [vmem:[#allocation25_spill] sm:$0xff] }
  0xb7   : > { %4873 = vmatmul.mubr.msk.f32.gmra.mrb[12].mxu1 %vm284_vm1, %v6875_v60 }
  0xb8   : > { %5097 = vmatmul.mubr.msk.f32.gmra.mrb[28].mxu0 %vm284_vm1, %v6372_v40  ;;  %4875 = vmatprep.mubr.msk.f32.mxu1 %vm284_vm1, %v6876_v4 }
  0xb9   : > { %5099 = vmatprep.mubr.msk.f32.mxu0 %vm284_vm1, %v4281_v41  ;;  %v6879_v41 = vld [vmem:[#allocation27_spill] sm:$0xff] }
  0xbb   : > { %4876 = vmatmul.mubr.msk.f32.gmra.mrb[14].mxu1 %vm284_vm1, %v6877_v2 }
  0xbc   : > { %5100 = vmatmul.mubr.msk.f32.gmra.mrb[30].mxu0 %vm284_vm1, %v4282_v10  ;;  %4878 = vmatprep.mubr.msk.f32.mxu1 %vm284_vm1, %v6878_v30  ;;  %v6896_v10 = vld [vmem:[#allocation38_spill] sm:$0xff] }
  0xbd   : > { %5104 = vmatprep.mubr.msk.f32.mxu0 %vm284_vm1, %v5752_v9  ;;  %v6880_v9 = vld [vmem:[#allocation28_spill] sm:$0xff] }
  0xbf   : > { %4879 = vmatmul.mubr.msk.f32.gmra.mrb[16].mxu1 %vm284_vm1, %v6070_v12 }
  0xc0   : > { %5105 = vmatmul.mubr.msk.f32.vlgmr.msra.gmra.mrb[0].mxu0 %vm284_vm1, %v5773_v13  ;;  %4881 = vmatprep.mubr.msk.f32.mxu1 %vm284_vm1, %v6879_v41  ;;  %v6881_v13 = vld [vmem:[#allocation29_spill] sm:$0xff] }
  0xc1   : > { %5153 = vmatpush3.msk.msra.mxu0 %vm381_vm0, %v6207_v11  ;;  %5107 = vmatprep.mubr.msk.f32.mxu0 %vm284_vm1, %v5783_v15  ;;  %v6882_v15 = vld [vmem:[#allocation30_spill] sm:$0xff]  ;;  %v6897_v11 = vld [vmem:[#allocation13_spill] sm:$0xff] }
  0xc3   : > { %4882 = vmatmul.mubr.msk.f32.gmra.mrb[18].mxu1 %vm284_vm1, %v6085_v3 }
  0xc4   : > { %5108 = vmatmul.mubr.msk.f32.gmra.mrb[2].mxu0 %vm284_vm1, %v5801_v17  ;;  %4884 = vmatprep.mubr.msk.f32.mxu1 %vm284_vm1, %v6088_v62  ;;  %v6883_v17 = vld [vmem:[#allocation31_spill] sm:$0xff] }
  0xc5   : > { %5110 = vmatprep.mubr.msk.f32.mxu0 %vm284_vm1, %v5807_v19  ;;  %v6884_v19 = vld [vmem:[#allocation32_spill] sm:$0xff] }
  0xc7   : > { %4885 = vmatmul.mubr.msk.f32.gmra.mrb[20].mxu1 %vm284_vm1, %v6103_v8 }
  0xc8   : > { %5111 = vmatmul.mubr.msk.f32.gmra.mrb[4].mxu0 %vm284_vm1, %v5821_v21  ;;  %4887 = vmatprep.mubr.msk.f32.mxu1 %vm284_vm1, %v6108_v0  ;;  %v6885_v21 = vld [vmem:[#allocation33_spill] sm:$0xff] }
  0xc9   : > { %5113 = vmatprep.mubr.msk.f32.mxu0 %vm284_vm1, %v5827_v23  ;;  %v6886_v23 = vld [vmem:[#allocation34_spill] sm:$0xff] }
  0xcb   : > { %4888 = vmatmul.mubr.msk.f32.gmra.mrb[22].mxu1 %vm284_vm1, %v6880_v9 }
  0xcc   : > { %5114 = vmatmul.mubr.msk.f32.gmra.mrb[6].mxu0 %vm284_vm1, %v5841_v25  ;;  %4890 = vmatprep.mubr.msk.f32.mxu1 %vm284_vm1, %v6881_v13  ;;  %v6887_v25 = vld [vmem:[#allocation35_spill] sm:$0xff] }
  0xcd   : > { %5116 = vmatprep.mubr.msk.f32.mxu0 %vm284_vm1, %v5847_v27  ;;  %v6888_v27 = vld [vmem:[#allocation5_spill] sm:$0xff] }
  0xcf   : > { %4891 = vmatmul.mubr.msk.f32.gmra.mrb[24].mxu1 %vm284_vm1, %v6882_v15 }
  0xd0   : > { %5117 = vmatmul.mubr.msk.f32.gmra.mrb[8].mxu0 %vm284_vm1, %v5861_v29  ;;  %4893 = vmatprep.mubr.msk.f32.mxu1 %vm284_vm1, %v6883_v17  ;;  %v6889_v29 = vld [vmem:[#allocation6_spill] sm:$0xff] }
  0xd1   : > { %5119 = vmatprep.mubr.msk.f32.mxu0 %vm284_vm1, %v5867_v31  ;;  %v6890_v31 = vld [vmem:[#allocation7_spill] sm:$0xff] }
  0xd3   : > { %4894 = vmatmul.mubr.msk.f32.gmra.mrb[26].mxu1 %vm284_vm1, %v6884_v19 }
  0xd4   : > { %5120 = vmatmul.mubr.msk.f32.gmra.mrb[10].mxu0 %vm284_vm1, %v5881_v33  ;;  %4896 = vmatprep.mubr.msk.f32.mxu1 %vm284_vm1, %v6885_v21  ;;  %v6891_v33 = vld [vmem:[#allocation8_spill] sm:$0xff] }
  0xd5   : > { %5122 = vmatprep.mubr.msk.f32.mxu0 %vm284_vm1, %v5887_v35  ;;  %v6893_v35 = vld [vmem:[#allocation10_spill] sm:$0xff] }
  0xd7   : > { %4897 = vmatmul.mubr.msk.f32.gmra.mrb[28].mxu1 %vm284_vm1, %v6886_v23 }
  0xd8   : > { %5123 = vmatmul.mubr.msk.f32.gmra.mrb[12].mxu0 %vm284_vm1, %v5901_v37  ;;  %4899 = vmatprep.mubr.msk.f32.mxu1 %vm284_vm1, %v6166_v6  ;;  %v6895_v37 = vld [vmem:[#allocation12_spill] sm:$0xff] }
  0xd9   : > { %5125 = vmatprep.mubr.msk.f32.mxu0 %vm284_vm1, %v6202_v5 }
  0xdb   : > { %4900 = vmatmul.mubr.msk.f32.gmra.mrb[30].mxu1 %vm284_vm1, %v6887_v25 }
  0xdc   : > { %5126 = vmatmul.mubr.msk.f32.gmra.mrb[14].mxu0 %vm284_vm1, %v6218_v7  ;;  %4904 = vmatprep.mubr.msk.f32.mxu1 %vm284_vm1, %v6888_v27  ;;  %v6898_v27 = vld [vmem:[#allocation14_spill] sm:$0xff] }
  0xdd   : > { %5128 = vmatprep.mubr.msk.f32.mxu0 %vm284_vm1, %v6223_v14 }
  0xdf   : > { %4905 = vmatmul.mubr.msk.f32.vlgmr.msra.gmra.mrb[0].mxu1 %vm284_vm1, %v6889_v29  ;;  %v6499_v29 = vld [vmem:[%s5735_s11 + $0x181] sm:$0xff] }
  0xe0   : > { %5129 = vmatmul.mubr.msk.f32.gmra.mrb[16].mxu0 %vm284_vm1, %v6236_v44  ;;  %5203 = vmatpush3.msk.msra.mxu1 %vm381_vm0, %v5714_v1  ;;  %v6892_v1 = vld [vmem:[#allocation9_spill] sm:$0xff] }
  0xe1   : > { %4907 = vmatprep.mubr.msk.f32.mxu1 %vm284_vm1, %v6890_v31  ;;  %5131 = vmatprep.mubr.msk.f32.mxu0 %vm284_vm1, %v6239_v18  ;;  %v6899_v31 = vld [vmem:[#allocation15_spill] sm:$0xff] }
  0xe3   : > { %4908 = vmatmul.mubr.msk.f32.gmra.mrb[2].mxu1 %vm284_vm1, %v5798_v16  ;;  %v6894_v16 = vld [vmem:[#allocation11_spill] sm:$0xff] }
  0xe4   : > { %5132 = vmatmul.mubr.msk.f32.gmra.mrb[18].mxu0 %vm284_vm1, %v6250_v20  ;;  %4910 = vmatprep.mubr.msk.f32.mxu1 %vm284_vm1, %v6891_v33  ;;  %v6900_v33 = vld [vmem:[#allocation16_spill] sm:$0xff] }
  0xe5   : > { %5134 = vmatprep.mubr.msk.f32.mxu0 %vm284_vm1, %v6253_v22 }
  0xe7   : > { %4911 = vmatmul.mubr.msk.f32.gmra.mrb[4].mxu1 %vm284_vm1, %v6892_v1  ;;  %v6510_v1 = vld [vmem:[%s5735_s11 + $0x189] sm:$0xff] }
  0xe8   : > { %5135 = vmatmul.mubr.msk.f32.gmra.mrb[20].mxu0 %vm284_vm1, %v6264_v24  ;;  %4913 = vmatprep.mubr.msk.f32.mxu1 %vm284_vm1, %v6893_v35  ;;  %v4347_v35 = vld [vmem:[%s5735_s11 + $0x199] sm:$0xff] }
  0xe9   : > { %5137 = vmatprep.mubr.msk.f32.mxu0 %vm284_vm1, %v6267_v26 }
  0xeb   : > { %4914 = vmatmul.mubr.msk.f32.gmra.mrb[6].mxu1 %vm284_vm1, %v6894_v16  ;;  %v6901_v16 = vld [vmem:[#allocation17_spill] sm:$0xff] }
  0xec   : > { %5138 = vmatmul.mubr.msk.f32.gmra.mrb[22].mxu0 %vm284_vm1, %v6278_v28  ;;  %4916 = vmatprep.mubr.msk.f32.mxu1 %vm284_vm1, %v6895_v37  ;;  %v4348_v37 = vld [vmem:[%s5735_s11 + $0x1a1] sm:$0xff] }
  0xed   : > { %5140 = vmatprep.mubr.msk.f32.mxu0 %vm284_vm1, %v6896_v10 }
  0xef   : > { %4917 = vmatmul.mubr.msk.f32.gmra.mrb[8].mxu1 %vm284_vm1, %v6897_v11  ;;  %v6902_v11 = vld [vmem:[#allocation18_spill] sm:$0xff] }
  0xf0   : > { %5141 = vmatmul.mubr.msk.f32.gmra.mrb[24].mxu0 %vm284_vm1, %v6292_v32  ;;  %4919 = vmatprep.mubr.msk.f32.mxu1 %vm284_vm1, %v6898_v27 }
  0xf1   : > { %5143 = vmatprep.mubr.msk.f32.mxu0 %vm284_vm1, %v6295_v34 }
  0xf3   : > { %4920 = vmatmul.mubr.msk.f32.gmra.mrb[10].mxu1 %vm284_vm1, %v6899_v31 }
  0xf4   : > { %5144 = vmatmul.mubr.msk.f32.gmra.mrb[26].mxu0 %vm284_vm1, %v6306_v36  ;;  %4922 = vmatprep.mubr.msk.f32.mxu1 %vm284_vm1, %v6900_v33 }
  0xf5   : > { %5146 = vmatprep.mubr.msk.f32.mxu0 %vm284_vm1, %v6499_v29 }
  0xf7   : > { %4923 = vmatmul.mubr.msk.f32.gmra.mrb[12].mxu1 %vm284_vm1, %v6901_v16 }
  0xf8   : > { %5147 = vmatmul.mubr.msk.f32.gmra.mrb[28].mxu0 %vm284_vm1, %v6510_v1  ;;  %4925 = vmatprep.mubr.msk.f32.mxu1 %vm284_vm1, %v5904_v38  ;;  %v6903_v38 = vld [vmem:[#allocation22_spill] sm:$0xff] }
  0xf9   : > { %5149 = vmatprep.mubr.msk.f32.mxu0 %vm284_vm1, %v4347_v35 }
  0xfb   : > { %4926 = vmatmul.mubr.msk.f32.gmra.mrb[14].mxu1 %vm284_vm1, %v6902_v11 }
  0xfc   : > { %5150 = vmatmul.mubr.msk.f32.gmra.mrb[30].mxu0 %vm284_vm1, %v4348_v37  ;;  %4928 = vmatprep.mubr.msk.f32.mxu1 %vm284_vm1, %v5924_v42  ;;  %v6904_v42 = vld [vmem:[#allocation24_spill] sm:$0xff] }
  0xfd   : > { %5154 = vmatprep.mubr.msk.f32.mxu0 %vm284_vm1, %v5927_v43  ;;  %v6905_v43 = vld [vmem:[#allocation26_spill] sm:$0xff] }
  0xff   : > { %4929 = vmatmul.mubr.msk.f32.gmra.mrb[16].mxu1 %vm284_vm1, %v5943_v45  ;;  %v6906_v45 = vld [vmem:[#allocation39_spill] sm:$0xff] }
 0x100   : > { %5155 = vmatmul.mubr.msk.f32.vlgmr.msra.gmra.mrb[0].mxu0 %vm284_vm1, %v5946_v46  ;;  %4931 = vmatprep.mubr.msk.f32.mxu1 %vm284_vm1, %v5951_v47 }
 0x101   : > { %5157 = vmatprep.mubr.msk.f32.mxu0 %vm284_vm1, %v5954_v48 }
 0x103   : > { %4932 = vmatmul.mubr.msk.f32.gmra.mrb[18].mxu1 %vm284_vm1, %v5967_v49 }
 0x104   : > { %5158 = vmatmul.mubr.msk.f32.gmra.mrb[2].mxu0 %vm284_vm1, %v5970_v50  ;;  %4934 = vmatprep.mubr.msk.f32.mxu1 %vm284_vm1, %v5973_v51 }
 0x105   : > { %5160 = vmatprep.mubr.msk.f32.mxu0 %vm284_vm1, %v5976_v52 }
 0x107   : > { %4935 = vmatmul.mubr.msk.f32.gmra.mrb[20].mxu1 %vm284_vm1, %v5987_v53  ;;  %v6656_v53 = vld [vmem:[%s6785_s2] ss:$0 sm:$0xff] }
 0x108   : > { %5161 = vmatmul.mubr.msk.f32.gmra.mrb[4].mxu0 %vm284_vm1, %v5990_v54  ;;  %4937 = vmatprep.mubr.msk.f32.mxu1 %vm284_vm1, %v5993_v55 }
 0x109   : > { %5163 = vmatprep.mubr.msk.f32.mxu0 %vm284_vm1, %v5996_v56 }
 0x10b   : > { %4938 = vmatmul.mubr.msk.f32.gmra.mrb[22].mxu1 %vm284_vm1, %v6007_v57 }
 0x10c   : > { %5164 = vmatmul.mubr.msk.f32.gmra.mrb[6].mxu0 %vm284_vm1, %v6010_v58  ;;  %4940 = vmatprep.mubr.msk.f32.mxu1 %vm284_vm1, %v6013_v59 }
 0x10d   : > { %5166 = vmatprep.mubr.msk.f32.mxu0 %vm284_vm1, %v6874_v39 }
 0x10f   : > { %4941 = vmatmul.mubr.msk.f32.gmra.mrb[24].mxu1 %vm284_vm1, %v6027_v61 }
 0x110   : > { %5167 = vmatmul.mubr.msk.f32.gmra.mrb[8].mxu0 %vm284_vm1, %v6875_v60  ;;  %4943 = vmatprep.mubr.msk.f32.mxu1 %vm284_vm1, %v6033_v63 }
 0x111   : > { %5169 = vmatprep.mubr.msk.f32.mxu0 %vm284_vm1, %v6876_v4 }
 0x113   : > { %4944 = vmatmul.mubr.msk.f32.gmra.mrb[26].mxu1 %vm284_vm1, %v6903_v38 }
 0x114   : > { %5170 = vmatmul.mubr.msk.f32.gmra.mrb[10].mxu0 %vm284_vm1, %v6877_v2  ;;  %4946 = vmatprep.mubr.msk.f32.mxu1 %vm284_vm1, %v6904_v42 }
 0x115   : > { %5172 = vmatprep.mubr.msk.f32.mxu0 %vm284_vm1, %v6878_v30 }
 0x117   : > { %4947 = vmatmul.mubr.msk.f32.gmra.mrb[28].mxu1 %vm284_vm1, %v6905_v43 }
 0x118   : > { %5173 = vmatmul.mubr.msk.f32.gmra.mrb[12].mxu0 %vm284_vm1, %v6070_v12  ;;  %4949 = vmatprep.mubr.msk.f32.mxu1 %vm284_vm1, %v6906_v45  ;;  %v6907_v12 = vld [vmem:[#allocation36_spill] sm:$0xff] }
 0x119   : > { %5175 = vmatprep.mubr.msk.f32.mxu0 %vm284_vm1, %v6879_v41 }
 0x11b   : > { %4950 = vmatmul.mubr.msk.f32.gmra.mrb[30].mxu1 %vm284_vm1, %v6372_v40 }
 0x11c   : > { %5176 = vmatmul.mubr.msk.f32.gmra.mrb[14].mxu0 %vm284_vm1, %v6085_v3  ;;  %4978 = vmatprep.mubr.msk.f32.mxu1 %vm284_vm1, %v6202_v5 }
 0x11d   : > { %5178 = vmatprep.mubr.msk.f32.mxu0 %vm284_vm1, %v6088_v62 }
 0x11f   : > { %4979 = vmatmul.mubr.msk.f32.vlgmr.msra.gmra.mrb[16].mxu1 %vm284_vm1, %v6218_v7 }
 0x120   : > { %5179 = vmatmul.mubr.msk.f32.gmra.mrb[16].mxu0 %vm284_vm1, %v6103_v8  ;;  %4981 = vmatprep.mubr.msk.f32.mxu1 %vm284_vm1, %v6223_v14  ;;  %v4413_v14 = vld [vmem:[%s5735_s11 + $0x19a] sm:$0xff] }
 0x121   : > { %5181 = vmatprep.mubr.msk.f32.mxu0 %vm284_vm1, %v6108_v0 }
 0x123   : > { %4982 = vmatmul.mubr.msk.f32.gmra.mrb[18].mxu1 %vm284_vm1, %v6236_v44 }
 0x124   : > { %5182 = vmatmul.mubr.msk.f32.gmra.mrb[18].mxu0 %vm284_vm1, %v6880_v9  ;;  %4984 = vmatprep.mubr.msk.f32.mxu1 %vm284_vm1, %v6239_v18  ;;  %v6908_v18 = vld [vmem:[#allocation37_spill] sm:$0xff] }
 0x125   : > { %5184 = vmatprep.mubr.msk.f32.mxu0 %vm284_vm1, %v6881_v13 }
 0x127   : > { %4985 = vmatmul.mubr.msk.f32.gmra.mrb[20].mxu1 %vm284_vm1, %v6250_v20  ;;  %v4414_v20 = vld [vmem:[%s5735_s11 + $0x1a2] sm:$0xff]  ;;  %s3818_s11 = sshll.u32 %s6663_s9, 4  ;;  %s6731_s11 = int_to_ptr.vmem [resolvable:$true] %s3818_s11 }
 0x128   : > { %5185 = vmatmul.mubr.msk.f32.gmra.mrb[20].mxu0 %vm284_vm1, %v6882_v15  ;;  %4987 = vmatprep.mubr.msk.f32.mxu1 %vm284_vm1, %v6253_v22  ;;  %s5550_s23 = scalar_lea.vmem %s6731_s11, 4096  ;;  %p5557_p1 = scmp.lt.s32.totalorder %s6731_s11, %s5555_s27 }
 0x129   : > { %5187 = vmatprep.mubr.msk.f32.mxu0 %vm284_vm1, %v6883_v17  ;;  %p5551_p12 = scmp.ne.s32.totalorder %s6731_s11, %s5550_s23  ;;  %p5558_p2 = scmp.lt.s32.totalorder %s5556_s28, %s5550_s23 }
 0x12b   : > { %4988 = vmatmul.mubr.msk.f32.gmra.mrb[22].mxu1 %vm284_vm1, %v6264_v24  ;;  %p5552_p13 = pnand %p5551_p12, %p5693_p4  ;;  %p5559_p3 = por %p5558_p2, %p5557_p1 }
 0x12c   : > { %5188 = vmatmul.mubr.msk.f32.gmra.mrb[22].mxu0 %vm284_vm1, %v6884_v19  ;;  %4990 = vmatprep.mubr.msk.f32.mxu1 %vm284_vm1, %v6267_v26 }
 0x12d   : > { %5190 = vmatprep.mubr.msk.f32.mxu0 %vm284_vm1, %v6885_v21  ;;  %p5553_p0 = pneg %p5552_p13 }
 0x12f   : > { %4991 = vmatmul.mubr.msk.f32.gmra.mrb[24].mxu1 %vm284_vm1, %v6278_v28  ;;  %p5560_p5 = pnand %p5559_p3, %p5553_p0 }
 0x130   : > { %5191 = vmatmul.mubr.msk.f32.gmra.mrb[24].mxu0 %vm284_vm1, %v6886_v23  ;;  %4993 = vmatprep.mubr.msk.f32.mxu1 %vm284_vm1, %v6896_v10 }
 0x131   : > { %5193 = vmatprep.mubr.msk.f32.mxu0 %vm284_vm1, %v6166_v6 }
 0x133   : > { %4994 = vmatmul.mubr.msk.f32.gmra.mrb[26].mxu1 %vm284_vm1, %v6292_v32 }
 0x134   : > { %5194 = vmatmul.mubr.msk.f32.gmra.mrb[26].mxu0 %vm284_vm1, %v6887_v25  ;;  %4996 = vmatprep.mubr.msk.f32.mxu1 %vm284_vm1, %v6295_v34 }
 0x135   : > { %5196 = vmatprep.mubr.msk.f32.mxu0 %vm284_vm1, %v6907_v12 }
 0x137   : > { %4997 = vmatmul.mubr.msk.f32.gmra.mrb[28].mxu1 %vm284_vm1, %v6306_v36 }
 0x138   : > { %5197 = vmatmul.mubr.msk.f32.gmra.mrb[28].mxu0 %vm284_vm1, %v6908_v18  ;;  %4999 = vmatprep.mubr.msk.f32.mxu1 %vm284_vm1, %v6499_v29 }
 0x139   : > { %5199 = vmatprep.mubr.msk.f32.mxu0 %vm284_vm1, %v4413_v14 }
 0x13b   : > { %5000 = vmatmul.mubr.msk.f32.gmra.mrb[30].mxu1 %vm284_vm1, %v6510_v1 }
 0x13c   : > { %5200 = vmatmul.mubr.msk.f32.gmra.mrb[30].mxu0 %vm284_vm1, %v4414_v20 }
 0x1b2   : > { %v4906_v22 = vpop.f32.mrb[0].mxu1 }
 0x1b3   : > { %v1624_v24 = vpop.f32.mrb[1].mxu1  ;;  %v5204_v56 = vadd.f32 %v4906_v22, %v6656_v53 }
 0x1b4   : > { %v5206_v57 = vadd.f32 %v6656_v53, %v1624_v24 }
 0x1b6   : > { %v4909_v26 = vpop.f32.mrb[2].mxu1 }
 0x1b7   : > { %v1634_v28 = vpop.f32.mrb[3].mxu1  ;;  %v5208_v63 = vadd.f32 %v4909_v26, %v6656_v53 }
 0x1b8   : > { %v5210_v0 = vadd.f32 %v6656_v53, %v1634_v28 }
 0x1ba   : > { %v4912_v32 = vpop.f32.mrb[4].mxu1 }
 0x1bb   : > { %v1644_v34 = vpop.f32.mrb[5].mxu1  ;;  %v5212_v5 = vadd.f32 %v4912_v32, %v6656_v53 }
 0x1bc   : > { %v5214_v7 = vadd.f32 %v6656_v53, %v1644_v34 }
 0x1be   : > { %v4915_v36 = vpop.f32.mrb[6].mxu1 }
 0x1bf   : > { %v1654_v46 = vpop.f32.mrb[7].mxu1  ;;  %v5216_v40 = vadd.f32 %v4915_v36, %v6656_v53 }
 0x1c0   : > { %v5218_v60 = vadd.f32 %v6656_v53, %v1654_v46 }
 0x1c2   : > { %v4918_v47 = vpop.f32.mrb[8].mxu1 }
 0x1c3   : > { %v1664_v48 = vpop.f32.mrb[9].mxu1  ;;  %v5220_v17 = vadd.f32 %v4918_v47, %v6656_v53 }
 0x1c4   : > { %v5222_v19 = vadd.f32 %v6656_v53, %v1664_v48 }
 0x1c6   : > { %v4921_v49 = vpop.f32.mrb[10].mxu1 }
 0x1c7   : > { %v1674_v50 = vpop.f32.mrb[11].mxu1  ;;  %v5224_v27 = vadd.f32 %v4921_v49, %v6656_v53 }
 0x1c8   : > { %v5226_v29 = vadd.f32 %v6656_v53, %v1674_v50 }
 0x1ca   : > { %v4924_v51 = vpop.f32.mrb[12].mxu1 }
 0x1cb   : > { %v1684_v52 = vpop.f32.mrb[13].mxu1  ;;  %v5228_v16 = vadd.f32 %v4924_v51, %v6656_v53 }
 0x1cc   : > { %v5230_v37 = vadd.f32 %v6656_v53, %v1684_v52 }
 0x1ce   : > { %v4927_v54 = vpop.f32.mrb[14].mxu1 }
 0x1cf   : > { %v1694_v55 = vpop.f32.mrb[15].mxu1  ;;  %v5232_v45 = vadd.f32 %v4927_v54, %v6656_v53 }
 0x1d0   : > { %v5234_v12 = vadd.f32 %v6656_v53, %v1694_v55 }
 0x1d3   : > { %v5156_v58 = vpop.f32.mrb[0].mxu0 }
 0x1d4   : > { %v5205_v59 = vadd.f32 %v5204_v56, %v5156_v58  ;;  %v3577_v61 = vpop.f32.mrb[1].mxu0 }
 0x1d5   : > { %v5207_v62 = vadd.f32 %v5206_v57, %v3577_v61 }
 0x1d6   : > { %3769 = vst [vmem:[%s6663_s9 + $0x8] sm:$0xff] %v5205_v59 }
 0x1d7   : > { %3768 = vst [vmem:[%s6663_s9] sm:$0xff] %v5207_v62  ;;  %v5159_v2 = vpop.f32.mrb[2].mxu0 }
 0x1d8   : > { %v5209_v3 = vadd.f32 %v5208_v63, %v5159_v2  ;;  %v3587_v4 = vpop.f32.mrb[3].mxu0 }
 0x1d9   : > { %v5211_v8 = vadd.f32 %v5210_v0, %v3587_v4 }
 0x1da   : > { %3771 = vst [vmem:[%s6663_s9 + $0x18] sm:$0xff] %v5209_v3 }
 0x1db   : > { %3770 = vst [vmem:[%s6663_s9 + $0x10] sm:$0xff] %v5211_v8  ;;  %v5162_v6 = vpop.f32.mrb[4].mxu0 }
 0x1dc   : > { %v5213_v44 = vadd.f32 %v5212_v5, %v5162_v6  ;;  %v3597_v30 = vpop.f32.mrb[5].mxu0 }
 0x1dd   : > { %v5215_v39 = vadd.f32 %v5214_v7, %v3597_v30 }
 0x1de   : > { %3773 = vst [vmem:[%s6663_s9 + $0x28] sm:$0xff] %v5213_v44 }
 0x1df   : > { %3772 = vst [vmem:[%s6663_s9 + $0x20] sm:$0xff] %v5215_v39  ;;  %v5165_v41 = vpop.f32.mrb[6].mxu0 }
 0x1e0   : > { %v5217_v9 = vadd.f32 %v5216_v40, %v5165_v41  ;;  %v3607_v13 = vpop.f32.mrb[7].mxu0 }
 0x1e1   : > { %v5219_v15 = vadd.f32 %v5218_v60, %v3607_v13 }
 0x1e2   : > { %3775 = vst [vmem:[%s6663_s9 + $0x38] sm:$0xff] %v5217_v9 }
 0x1e3   : > { %3774 = vst [vmem:[%s6663_s9 + $0x30] sm:$0xff] %v5219_v15  ;;  %v5168_v21 = vpop.f32.mrb[8].mxu0 }
 0x1e4   : > { %v5221_v23 = vadd.f32 %v5220_v17, %v5168_v21  ;;  %v3617_v25 = vpop.f32.mrb[9].mxu0 }
 0x1e5   : > { %v5223_v10 = vadd.f32 %v5222_v19, %v3617_v25 }
 0x1e6   : > { %3777 = vst [vmem:[%s6663_s9 + $0x48] sm:$0xff] %v5221_v23 }
 0x1e7   : > { %3776 = vst [vmem:[%s6663_s9 + $0x40] sm:$0xff] %v5223_v10  ;;  %v5171_v31 = vpop.f32.mrb[10].mxu0 }
 0x1e8   : > { %v5225_v33 = vadd.f32 %v5224_v27, %v5171_v31  ;;  %v3627_v1 = vpop.f32.mrb[11].mxu0 }
 0x1e9   : > { %v5227_v35 = vadd.f32 %v5226_v29, %v3627_v1 }
 0x1ea   : > { %3779 = vst [vmem:[%s6663_s9 + $0x58] sm:$0xff] %v5225_v33 }
 0x1eb   : > { %3778 = vst [vmem:[%s6663_s9 + $0x50] sm:$0xff] %v5227_v35  ;;  %v5174_v11 = vpop.f32.mrb[12].mxu0 }
 0x1ec   : > { %v5229_v38 = vadd.f32 %v5228_v16, %v5174_v11  ;;  %v3637_v42 = vpop.f32.mrb[13].mxu0 }
 0x1ed   : > { %v5231_v43 = vadd.f32 %v5230_v37, %v3637_v42 }
 0x1ee   : > { %3781 = vst [vmem:[%s6663_s9 + $0x68] sm:$0xff] %v5229_v38 }
 0x1ef   : > { %3780 = vst [vmem:[%s6663_s9 + $0x60] sm:$0xff] %v5231_v43  ;;  %v5177_v14 = vpop.f32.mrb[14].mxu0 }
 0x1f0   : > { %v5233_v18 = vadd.f32 %v5232_v45, %v5177_v14  ;;  %v3647_v20 = vpop.f32.mrb[15].mxu0 }
 0x1f1   : > { %v5235_v22 = vadd.f32 %v5234_v12, %v3647_v20 }
 0x1f2   : > { %3783 = vst [vmem:[%s6663_s9 + $0x78] sm:$0xff] %v5233_v18  ;;  %v4980_v24 = vpop.f32.mrb[16].mxu1 }
 0x1f3   : > { %3782 = vst [vmem:[%s6663_s9 + $0x70] sm:$0xff] %v5235_v22  ;;  %v5180_v26 = vpop.f32.mrb[16].mxu0  ;;  %v5236_v28 = vadd.f32 %v4980_v24, %v6656_v53  ;;  %v2094_v32 = vpop.f32.mrb[17].mxu1 }
 0x1f4   : > { %v3657_v34 = vpop.f32.mrb[17].mxu0  ;;  %v5238_v36 = vadd.f32 %v6656_v53, %v2094_v32 }
 0x1f5   : > { %v5237_v46 = vadd.f32 %v5236_v28, %v5180_v26 }
 0x1f6   : > { %v5239_v47 = vadd.f32 %v5238_v36, %v3657_v34  ;;  %v4983_v48 = vpop.f32.mrb[18].mxu1 }
 0x1f7   : > { %v5183_v49 = vpop.f32.mrb[18].mxu0  ;;  %3785 = vst [vmem:[%s6663_s9 + $0x88] sm:$0xff] %v5237_v46  ;;  %v5240_v50 = vadd.f32 %v4983_v48, %v6656_v53  ;;  %v2104_v51 = vpop.f32.mrb[19].mxu1 }
 0x1f8   : > { %v3667_v52 = vpop.f32.mrb[19].mxu0  ;;  %3784 = vst [vmem:[%s6663_s9 + $0x80] sm:$0xff] %v5239_v47  ;;  %v5242_v54 = vadd.f32 %v6656_v53, %v2104_v51 }
 0x1f9   : > { %v5241_v55 = vadd.f32 %v5240_v50, %v5183_v49 }
 0x1fa   : > { %v5243_v56 = vadd.f32 %v5242_v54, %v3667_v52  ;;  %v4986_v57 = vpop.f32.mrb[20].mxu1 }
 0x1fb   : > { %v5186_v58 = vpop.f32.mrb[20].mxu0  ;;  %3787 = vst [vmem:[%s6663_s9 + $0x98] sm:$0xff] %v5241_v55  ;;  %v5244_v59 = vadd.f32 %v4986_v57, %v6656_v53  ;;  %v2114_v61 = vpop.f32.mrb[21].mxu1 }
 0x1fc   : > { %v3677_v62 = vpop.f32.mrb[21].mxu0  ;;  %3786 = vst [vmem:[%s6663_s9 + $0x90] sm:$0xff] %v5243_v56  ;;  %v5246_v63 = vadd.f32 %v6656_v53, %v2114_v61 }
 0x1fd   : > { %v5245_v0 = vadd.f32 %v5244_v59, %v5186_v58 }
 0x1fe   : > { %v5247_v2 = vadd.f32 %v5246_v63, %v3677_v62  ;;  %v4989_v3 = vpop.f32.mrb[22].mxu1 }
 0x1ff   : > { %v5189_v4 = vpop.f32.mrb[22].mxu0  ;;  %3789 = vst [vmem:[%s6663_s9 + $0xa8] sm:$0xff] %v5245_v0  ;;  %v5248_v8 = vadd.f32 %v4989_v3, %v6656_v53  ;;  %v2124_v5 = vpop.f32.mrb[23].mxu1 }
 0x200   : > { %v3687_v7 = vpop.f32.mrb[23].mxu0  ;;  %3788 = vst [vmem:[%s6663_s9 + $0xa0] sm:$0xff] %v5247_v2  ;;  %v5250_v6 = vadd.f32 %v6656_v53, %v2124_v5 }
 0x201   : > { %v5249_v44 = vadd.f32 %v5248_v8, %v5189_v4 }
 0x202   : > { %v5251_v30 = vadd.f32 %v5250_v6, %v3687_v7  ;;  %v4992_v39 = vpop.f32.mrb[24].mxu1 }
 0x203   : > { %v5192_v40 = vpop.f32.mrb[24].mxu0  ;;  %3791 = vst [vmem:[%s6663_s9 + $0xb8] sm:$0xff] %v5249_v44  ;;  %v5252_v60 = vadd.f32 %v4992_v39, %v6656_v53  ;;  %v2134_v41 = vpop.f32.mrb[25].mxu1 }
 0x204   : > { %v3697_v9 = vpop.f32.mrb[25].mxu0  ;;  %3790 = vst [vmem:[%s6663_s9 + $0xb0] sm:$0xff] %v5251_v30  ;;  %v5254_v13 = vadd.f32 %v6656_v53, %v2134_v41 }
 0x205   : > { %v5253_v15 = vadd.f32 %v5252_v60, %v5192_v40 }
 0x206   : > { %v5255_v17 = vadd.f32 %v5254_v13, %v3697_v9  ;;  %v4995_v19 = vpop.f32.mrb[26].mxu1 }
 0x207   : > { %v5195_v21 = vpop.f32.mrb[26].mxu0  ;;  %3793 = vst [vmem:[%s6663_s9 + $0xc8] sm:$0xff] %v5253_v15  ;;  %v5256_v23 = vadd.f32 %v4995_v19, %v6656_v53  ;;  %v2144_v25 = vpop.f32.mrb[27].mxu1 }
 0x208   : > { %v3707_v10 = vpop.f32.mrb[27].mxu0  ;;  %3792 = vst [vmem:[%s6663_s9 + $0xc0] sm:$0xff] %v5255_v17  ;;  %v5258_v27 = vadd.f32 %v6656_v53, %v2144_v25 }
 0x209   : > { %v5257_v29 = vadd.f32 %v5256_v23, %v5195_v21 }
 0x20a   : > { %v5259_v31 = vadd.f32 %v5258_v27, %v3707_v10  ;;  %v4998_v33 = vpop.f32.mrb[28].mxu1 }
 0x20b   : > { %v5198_v1 = vpop.f32.mrb[28].mxu0  ;;  %3795 = vst [vmem:[%s6663_s9 + $0xd8] sm:$0xff] %v5257_v29  ;;  %v5260_v35 = vadd.f32 %v4998_v33, %v6656_v53  ;;  %v2154_v16 = vpop.f32.mrb[29].mxu1 }
 0x20c   : > { %v3717_v37 = vpop.f32.mrb[29].mxu0  ;;  %3794 = vst [vmem:[%s6663_s9 + $0xd0] sm:$0xff] %v5259_v31  ;;  %v5262_v11 = vadd.f32 %v6656_v53, %v2154_v16 }
 0x20d   : > { %v5261_v38 = vadd.f32 %v5260_v35, %v5198_v1 }
 0x20e   : > { %v5263_v42 = vadd.f32 %v5262_v11, %v3717_v37  ;;  %v5001_v43 = vpop.f32.mrb[30].mxu1 }
 0x20f   : > { %v5201_v45 = vpop.f32.mrb[30].mxu0  ;;  %3797 = vst [vmem:[%s6663_s9 + $0xe8] sm:$0xff] %v5261_v38  ;;  %v5264_v12 = vadd.f32 %v5001_v43, %v6656_v53  ;;  %v2164_v14 = vpop.f32.mrb[31].mxu1 }
 0x210   : > { %v3727_v18 = vpop.f32.mrb[31].mxu0  ;;  %3796 = vst [vmem:[%s6663_s9 + $0xe0] sm:$0xff] %v5263_v42  ;;  %v5266_v20 = vadd.f32 %v6656_v53, %v2164_v14 }
 0x211   : > { %v5265_v22 = vadd.f32 %v5264_v12, %v5201_v45 }
 0x212   : > { %v5267_v24 = vadd.f32 %v5266_v20, %v3727_v18 }
 0x213   : > { %3799 = vst [vmem:[%s6663_s9 + $0xf8] sm:$0xff] %v5265_v22 }
 0x214   : > { %3798 = vst [vmem:[%s6663_s9 + $0xf0] sm:$0xff] %v5267_v24 }
 0x215   : > { %5563 = shalt.err (!%p5560_p5)
}
 0x216   : > { %s5564_s29 = scalar_lea.hbm %s6729_s21, 4096  ;;  %s5568_s5 = scalar_lea.hbm %s6786_s3, 8192 }
 0x217   : > { %p5565_p6 = scmp.ne.s32.totalorder %s6729_s21, %s5564_s29  ;;  %p5569_p10 = scmp.lt.u32.totalorder %s6729_s21, %s6786_s3 }
 0x218   : > { %p5570_p11 = scmp.lt.u32.totalorder %s5568_s5, %s5564_s29  ;;  %p5572_p13 = scmp.lt.u32.totalorder %s5564_s29, %s6729_s21 }
 0x219   : > { %p5566_p7 = pnand %p5565_p6, %p5693_p4 }
 0x21a   : > { %p5571_p12 = por %p5570_p11, %p5569_p10 }
 0x21b   : > { %p5567_p9 = pneg %p5566_p7 }
 0x21c   : > { %p5573_p0 = por %p5572_p13, %p5571_p12 }
 0x21e   : > { %p5574_p1 = pnand %p5573_p0, %p5567_p9 }
 0x220   : > { %5577 = shalt.err (!%p5574_p1)
}
 0x221   : > { %s5631_s8 = smov 128   ;;  %s5632_s9 = smov 8  }
 0x222   : > { %5493 = dma.vmem_to_hbm [thread:$0]  (%p5693_p4), %s6731_s11, 4096, %s6729_s21, %s6737_s15, %s5631_s8, %s5631_s8, %s5632_s9  }
 0x223 PF: > { %p5499_p2 = scmp.ge.s32.totalorder %s5628_s17, 2  ;;  %s3833_s10 = sand.u32 1, %s5608_s12  }
 0x224   : > { %s3834_s18 = scalar_lea.sflag [#allocation3], %s3833_s10 }
 0x225   : > { %p5496_p3 = pnand %p5499_p2, %p5700_p8 }
 0x227   : > { %5603 = dma.done.wait (!%p5496_p3), %s3834_s18, 4096  }
 0x228   : > { %5605 = vsyncadd (!%p5496_p3), %s3834_s18, 4294963200  ;;  %s16_s17 = sadd.s32 1, %s5628_s17   ;;  %s6909_s12 = smov %s5612_s13 }
 0x229   : > { %p13_p5 = scmp.ge.s32.totalorder %s16_s17, 4   ;;  %s6910_s13 = smov %s5616_s14 }
 0x22a   : > { %s6911_s14 = smov %s5706_s25  ;;  %s6912_s15 = smov %s5624_s16 }
 0x22b   : > { %s6913_s16 = smov %s6915_s20  ;;  %15 = sbr.rel (!%p13_p5) target bundleno = 4 (0x4), region = 84 }
 0x232   :  { %3839 = vsyncpa [#allocation3], 1 }
 0x233   :  { %3841 = vsyncpa [#allocation3 + $0x1], 1 }

</bundles_post_ra>
